<compile_context>
chip_gen: v7x
topology: tpu7x:2x2x1
jax: 0.10.0
libtpu: 0.0.40
codegen_flags: <defaults>
</compile_context>

<pallas_src>
import jax
import jax.numpy as jnp
from jax.experimental import pallas as pl
from jax.experimental.pallas import tpu as pltpu

# ---- static configuration (small synthetic sizes) ---------------------------
N_GRAPHS = 2            # len(batch)
NODES_PER_GRAPH = 8     # C
V = N_GRAPHS * NODES_PER_GRAPH
E = 24                  # total edges in the batched graph
NUM_OBJECT = 2          # schedule pairs per graph
P = N_GRAPHS * NUM_OBJECT
N_ENC_DIM = 4           # model_config.n_enc_dim
MODEL_DIM = 32          # model_config.model_dim
HALF_DIM = MODEL_DIM // 2
NUM_LAYERS = 2          # model_config.num_layers
EDGE_TYPE = "A"
EDGE_IN_DIM = len(EDGE_TYPE)   # edge_enc input dim


def mpnn_kernel(nf_ref, ef_ref, ssrc_ref, sdst_ref, sdstT_ref,
                sag_ref, stk_ref, label_ref,
                wne_ref, bne_ref, wee_ref, bee_ref,
                wmd_ref, wms_ref, wme_ref, bmsg_ref,
                wuh_ref, wua_ref, bupd_ref,
                w1a_ref, w1t_ref, b1_ref,
                w2_ref, b2_ref, w3_ref, b3_ref,
                loss_ref):
    f32 = jnp.float32

    # node encoder (K=4) on the MXU; edge encoder (K=1) as a VPU broadcast
    # multiply: [E,1] * [1,D] -> [E,D]  (outer-product shaped, no MXU needed).
    h = jnp.dot(nf_ref[...], wne_ref[...], preferred_element_type=f32) + bne_ref[...]
    e = ef_ref[...] * wee_ref[...] + bee_ref[...]

    s_src = ssrc_ref[...]      # [E, V] one-hot of edge source nodes
    s_dst = sdst_ref[...]      # [E, V] one-hot of edge destination nodes
    s_dst_t = sdstT_ref[...]   # [V, E] = s_dst.T, precomputed in the wrapper

    # message-passing layers (unrolled: NUM_LAYERS is tiny and static)
    for l in range(NUM_LAYERS):
        x_src = jnp.dot(s_src, h, preferred_element_type=f32)     # [E, D] gather
        x_dst = jnp.dot(s_dst, h, preferred_element_type=f32)     # [E, D] gather
        # message MLP with split weights -> no [E, 3D] lane concat
        m = jax.nn.relu(
            jnp.dot(x_dst, wmd_ref[l], preferred_element_type=f32)
            + jnp.dot(x_src, wms_ref[l], preferred_element_type=f32)
            + jnp.dot(e, wme_ref[l], preferred_element_type=f32)
            + bmsg_ref[l])
        aggr = jnp.dot(s_dst_t, m, preferred_element_type=f32)    # [V, D] scatter-add
        # node update with split weights -> no [V, 2D] lane concat; residual
        h = jax.nn.relu(
            jnp.dot(h, wuh_ref[l], preferred_element_type=f32)
            + jnp.dot(aggr, wua_ref[l], preferred_element_type=f32)
            + bupd_ref[l]) + h

    # readout: schedule gather via one-hot selection matmuls (lane-dense, no
    # sub-8-row slices), feeding split halves of W1.
    agent = jnp.dot(sag_ref[...], h, preferred_element_type=f32)   # [P, D]
    task = jnp.dot(stk_ref[...], h, preferred_element_type=f32)    # [P, D]

    # MLP([2D, D, D//2, 1])
    hid1 = jax.nn.relu(
        jnp.dot(agent, w1a_ref[...], preferred_element_type=f32)
        + jnp.dot(task, w1t_ref[...], preferred_element_type=f32)
        + b1_ref[...])
    hid2 = jax.nn.relu(
        jnp.dot(hid1, w2_ref[...], preferred_element_type=f32) + b2_ref[...])
    y_hat = jnp.dot(hid2, w3_ref[...], preferred_element_type=f32) + b3_ref[...]

    # MSELoss
    diff = y_hat - label_ref[...]
    loss_ref[...] = jnp.mean(diff * diff).reshape(1, 1)


def mpnn_forward(nf, ef, edge_src, edge_dst, schedule, label, params):
    D = MODEL_DIM

    # one-hot gather / scatter / selection matrices and the scatter transpose
    # are built ONCE here in plain JAX (no in-kernel XLU transpose / slicing).
    s_src = jax.nn.one_hot(edge_src, V, dtype=jnp.float32)           # [E, V]
    s_dst = jax.nn.one_hot(edge_dst, V, dtype=jnp.float32)           # [E, V]
    s_dst_t = jnp.transpose(s_dst)                                   # [V, E]
    s_agent = jax.nn.one_hot(schedule[:, 0], V, dtype=jnp.float32)   # [P, V]
    s_task = jax.nn.one_hot(schedule[:, 1], V, dtype=jnp.float32)    # [P, V]

    # split concat-style weights once in the wrapper
    wmsg = params["wmsg"]                       # [L, 3D, D]
    wmd, wms, wme = wmsg[:, :D], wmsg[:, D:2 * D], wmsg[:, 2 * D:]
    wupd = params["wupd"]                       # [L, 2D, D]
    wuh, wua = wupd[:, :D], wupd[:, D:]
    w1 = params["w1"]                           # [2D, D]
    w1a, w1t = w1[:D], w1[D:]

    inputs = (nf, ef, s_src, s_dst, s_dst_t, s_agent, s_task, label,
              params["wne"], params["bne"], params["wee"], params["bee"],
              wmd, wms, wme, params["bmsg"],
              wuh, wua, params["bupd"],
              w1a, w1t, params["b1"],
              params["w2"], params["b2"], params["w3"], params["b3"])

    vmem = pl.BlockSpec(memory_space=pltpu.MemorySpace.VMEM)
    return pl.pallas_call(
        mpnn_kernel,
        out_shape=jax.ShapeDtypeStruct((1, 1), jnp.float32),
        in_specs=[vmem] * len(inputs),
        out_specs=vmem,
    )(*inputs)


def init_params(key):
    ks = jax.random.split(key, 16)
    D = MODEL_DIM

    def lin(k, fan_in, fan_out):
        return jax.random.normal(k, (fan_in, fan_out), jnp.float32) / jnp.sqrt(
            jnp.float32(fan_in))

    params = {
        "wne": lin(ks[0], N_ENC_DIM, D),
        "bne": jnp.zeros((1, D), jnp.float32),
        "wee": lin(ks[1], EDGE_IN_DIM, D),          # [1, D]
        "bee": jnp.zeros((1, D), jnp.float32),
        "wmsg": jnp.stack([lin(ks[2 + l], 3 * D, D) for l in range(NUM_LAYERS)]),
        "bmsg": jnp.zeros((NUM_LAYERS, 1, D), jnp.float32),
        "wupd": jnp.stack([lin(ks[6 + l], 2 * D, D) for l in range(NUM_LAYERS)]),
        "bupd": jnp.zeros((NUM_LAYERS, 1, D), jnp.float32),
        "w1": lin(ks[10], 2 * D, D),
        "b1": jnp.zeros((1, D), jnp.float32),
        "w2": lin(ks[11], D, HALF_DIM),
        "b2": jnp.zeros((1, HALF_DIM), jnp.float32),
        "w3": lin(ks[12], HALF_DIM, 1),
        "b3": jnp.zeros((1, 1), jnp.float32),
    }
    return params


if __name__ == "__main__":
    key = jax.random.PRNGKey(0)
    k_nf, k_ea, k_src, k_dst, k_y, k_par = jax.random.split(key, 6)

    # batch.x : [V, n_enc_dim]
    nf = jax.random.normal(k_nf, (V, N_ENC_DIM), jnp.float32)

    # batch.edge_index : per-graph random edges, offset into the batched graph
    e_per_g = E // N_GRAPHS
    src = jax.random.randint(k_src, (N_GRAPHS, e_per_g), 0, NODES_PER_GRAPH)
    dst = jax.random.randint(k_dst, (N_GRAPHS, e_per_g), 0, NODES_PER_GRAPH)
    offs = (jnp.arange(N_GRAPHS) * NODES_PER_GRAPH)[:, None]
    edge_src = (src + offs).reshape(-1)        # [E]
    edge_dst = (dst + offs).reshape(-1)        # [E]

    # batch.edge_attr : [E, 3]; edge_type='A' -> ef = edge_attr[:, 0:1]
    edge_attr = jax.random.normal(k_ea, (E, 3), jnp.float32)
    ef = edge_attr[:, 0:1]

    # batch.schedule -> [P, 2] (agent node, task node) per pair: the last
    # 2*num_object nodes of each graph (agents then tasks).
    agent_idx = (offs + NODES_PER_GRAPH - 2 * NUM_OBJECT
                 + jnp.arange(NUM_OBJECT)[None, :]).reshape(-1)
    task_idx = (offs + NODES_PER_GRAPH - NUM_OBJECT
                + jnp.arange(NUM_OBJECT)[None, :]).reshape(-1)
    schedule = jnp.stack([agent_idx, task_idx], axis=-1)   # [P, 2]

    # batch.y -> [P, 1]
    label = jax.random.normal(k_y, (P, 1), jnp.float32)

    params = init_params(k_par)

    loss = mpnn_forward(nf, ef, edge_src, edge_dst, schedule, label, params)
    jax.block_until_ready(loss)
    print("KERNEL_OK")
</pallas_src>

<mosaic_0001>
module attributes {stable_mosaic.version = 11 : i64} {
  func.func @mpnn_kernel(%arg0: memref<16x4xf32, #tpu.memory_space<vmem>>, %arg1: memref<24x1xf32, #tpu.memory_space<vmem>>, %arg2: memref<24x16xf32, #tpu.memory_space<vmem>>, %arg3: memref<24x16xf32, #tpu.memory_space<vmem>>, %arg4: memref<16x24xf32, #tpu.memory_space<vmem>>, %arg5: memref<4x16xf32, #tpu.memory_space<vmem>>, %arg6: memref<4x16xf32, #tpu.memory_space<vmem>>, %arg7: memref<4x1xf32, #tpu.memory_space<vmem>>, %arg8: memref<4x32xf32, #tpu.memory_space<vmem>>, %arg9: memref<1x32xf32, #tpu.memory_space<vmem>>, %arg10: memref<1x32xf32, #tpu.memory_space<vmem>>, %arg11: memref<1x32xf32, #tpu.memory_space<vmem>>, %arg12: memref<2x32x32xf32, #tpu.memory_space<vmem>>, %arg13: memref<2x32x32xf32, #tpu.memory_space<vmem>>, %arg14: memref<2x32x32xf32, #tpu.memory_space<vmem>>, %arg15: memref<2x1x32xf32, #tpu.memory_space<vmem>>, %arg16: memref<2x32x32xf32, #tpu.memory_space<vmem>>, %arg17: memref<2x32x32xf32, #tpu.memory_space<vmem>>, %arg18: memref<2x1x32xf32, #tpu.memory_space<vmem>>, %arg19: memref<32x32xf32, #tpu.memory_space<vmem>>, %arg20: memref<32x32xf32, #tpu.memory_space<vmem>>, %arg21: memref<1x32xf32, #tpu.memory_space<vmem>>, %arg22: memref<32x16xf32, #tpu.memory_space<vmem>>, %arg23: memref<1x16xf32, #tpu.memory_space<vmem>>, %arg24: memref<16x1xf32, #tpu.memory_space<vmem>>, %arg25: memref<1x1xf32, #tpu.memory_space<vmem>>, %arg26: memref<1x1xf32, #tpu.memory_space<vmem>>) attributes {dimension_semantics = [], scalar_prefetch = 0 : i64, scratch_operands = 0 : i64, tpu.core_type = #tpu.core_type<tc>} {
    %c0 = arith.constant 0 : index
    %c0_0 = arith.constant 0 : index
    %0 = vector.load %arg0[%c0, %c0_0] : memref<16x4xf32, #tpu.memory_space<vmem>>, vector<16x4xf32>
    %c0_1 = arith.constant 0 : index
    %c0_2 = arith.constant 0 : index
    %1 = vector.load %arg8[%c0_1, %c0_2] : memref<4x32xf32, #tpu.memory_space<vmem>>, vector<4x32xf32>
    %cst = arith.constant dense<0.000000e+00> : vector<16x32xf32>
    %2 = tpu.matmul %0, %1, %cst {dimension_numbers = #tpu.dot_dimension_numbers<[1], [0], [0], [1], [0, 0, 1, 1], [], []>} : vector<16x4xf32>, vector<4x32xf32>, vector<16x32xf32> -> vector<16x32xf32>
    %c0_3 = arith.constant 0 : index
    %c0_4 = arith.constant 0 : index
    %3 = vector.load %arg9[%c0_3, %c0_4] : memref<1x32xf32, #tpu.memory_space<vmem>>, vector<1x32xf32>
    %4 = vector.broadcast %3 : vector<1x32xf32> to vector<16x32xf32>
    %5 = arith.addf %2, %4 : vector<16x32xf32>
    %c0_5 = arith.constant 0 : index
    %c0_6 = arith.constant 0 : index
    %6 = vector.load %arg1[%c0_5, %c0_6] : memref<24x1xf32, #tpu.memory_space<vmem>>, vector<24x1xf32>
    %c0_7 = arith.constant 0 : index
    %c0_8 = arith.constant 0 : index
    %7 = vector.load %arg10[%c0_7, %c0_8] : memref<1x32xf32, #tpu.memory_space<vmem>>, vector<1x32xf32>
    %8 = vector.broadcast %6 : vector<24x1xf32> to vector<24x32xf32>
    %9 = vector.broadcast %7 : vector<1x32xf32> to vector<24x32xf32>
    %10 = arith.mulf %8, %9 : vector<24x32xf32>
    %c0_9 = arith.constant 0 : index
    %c0_10 = arith.constant 0 : index
    %11 = vector.load %arg11[%c0_9, %c0_10] : memref<1x32xf32, #tpu.memory_space<vmem>>, vector<1x32xf32>
    %12 = vector.broadcast %11 : vector<1x32xf32> to vector<24x32xf32>
    %13 = arith.addf %10, %12 : vector<24x32xf32>
    %c0_11 = arith.constant 0 : index
    %c0_12 = arith.constant 0 : index
    %14 = vector.load %arg2[%c0_11, %c0_12] : memref<24x16xf32, #tpu.memory_space<vmem>>, vector<24x16xf32>
    %c0_13 = arith.constant 0 : index
    %c0_14 = arith.constant 0 : index
    %15 = vector.load %arg3[%c0_13, %c0_14] : memref<24x16xf32, #tpu.memory_space<vmem>>, vector<24x16xf32>
    %c0_15 = arith.constant 0 : index
    %c0_16 = arith.constant 0 : index
    %16 = vector.load %arg4[%c0_15, %c0_16] : memref<16x24xf32, #tpu.memory_space<vmem>>, vector<16x24xf32>
    %cst_17 = arith.constant dense<0.000000e+00> : vector<24x32xf32>
    %17 = tpu.matmul %14, %5, %cst_17 {dimension_numbers = #tpu.dot_dimension_numbers<[1], [0], [0], [1], [0, 0, 1, 1], [], []>} : vector<24x16xf32>, vector<16x32xf32>, vector<24x32xf32> -> vector<24x32xf32>
    %cst_18 = arith.constant dense<0.000000e+00> : vector<24x32xf32>
    %18 = tpu.matmul %15, %5, %cst_18 {dimension_numbers = #tpu.dot_dimension_numbers<[1], [0], [0], [1], [0, 0, 1, 1], [], []>} : vector<24x16xf32>, vector<16x32xf32>, vector<24x32xf32> -> vector<24x32xf32>
    %c0_19 = arith.constant 0 : index
    %c0_20 = arith.constant 0 : index
    %c0_21 = arith.constant 0 : index
    %19 = vector.load %arg12[%c0_19, %c0_20, %c0_21] : memref<2x32x32xf32, #tpu.memory_space<vmem>>, vector<1x32x32xf32>
    %20 = vector.shape_cast %19 : vector<1x32x32xf32> to vector<32x32xf32>
    %cst_22 = arith.constant dense<0.000000e+00> : vector<24x32xf32>
    %21 = tpu.matmul %18, %20, %cst_22 {dimension_numbers = #tpu.dot_dimension_numbers<[1], [0], [0], [1], [0, 0, 1, 1], [], []>} : vector<24x32xf32>, vector<32x32xf32>, vector<24x32xf32> -> vector<24x32xf32>
    %c0_23 = arith.constant 0 : index
    %c0_24 = arith.constant 0 : index
    %c0_25 = arith.constant 0 : index
    %22 = vector.load %arg13[%c0_23, %c0_24, %c0_25] : memref<2x32x32xf32, #tpu.memory_space<vmem>>, vector<1x32x32xf32>
    %23 = vector.shape_cast %22 : vector<1x32x32xf32> to vector<32x32xf32>
    %cst_26 = arith.constant dense<0.000000e+00> : vector<24x32xf32>
    %24 = tpu.matmul %17, %23, %cst_26 {dimension_numbers = #tpu.dot_dimension_numbers<[1], [0], [0], [1], [0, 0, 1, 1], [], []>} : vector<24x32xf32>, vector<32x32xf32>, vector<24x32xf32> -> vector<24x32xf32>
    %25 = arith.addf %21, %24 : vector<24x32xf32>
    %c0_27 = arith.constant 0 : index
    %c0_28 = arith.constant 0 : index
    %c0_29 = arith.constant 0 : index
    %26 = vector.load %arg14[%c0_27, %c0_28, %c0_29] : memref<2x32x32xf32, #tpu.memory_space<vmem>>, vector<1x32x32xf32>
    %27 = vector.shape_cast %26 : vector<1x32x32xf32> to vector<32x32xf32>
    %cst_30 = arith.constant dense<0.000000e+00> : vector<24x32xf32>
    %28 = tpu.matmul %13, %27, %cst_30 {dimension_numbers = #tpu.dot_dimension_numbers<[1], [0], [0], [1], [0, 0, 1, 1], [], []>} : vector<24x32xf32>, vector<32x32xf32>, vector<24x32xf32> -> vector<24x32xf32>
    %29 = arith.addf %25, %28 : vector<24x32xf32>
    %c0_31 = arith.constant 0 : index
    %c0_32 = arith.constant 0 : index
    %c0_33 = arith.constant 0 : index
    %30 = vector.load %arg15[%c0_31, %c0_32, %c0_33] : memref<2x1x32xf32, #tpu.memory_space<vmem>>, vector<1x1x32xf32>
    %31 = vector.shape_cast %30 : vector<1x1x32xf32> to vector<1x32xf32>
    %32 = vector.broadcast %31 : vector<1x32xf32> to vector<24x32xf32>
    %33 = arith.addf %29, %32 : vector<24x32xf32>
    %cst_34 = arith.constant 0.000000e+00 : f32
    %34 = vector.broadcast %cst_34 : f32 to vector<24x32xf32>
    %35 = arith.maximumf %33, %34 : vector<24x32xf32>
    %cst_35 = arith.constant dense<0.000000e+00> : vector<16x32xf32>
    %36 = tpu.matmul %16, %35, %cst_35 {dimension_numbers = #tpu.dot_dimension_numbers<[1], [0], [0], [1], [0, 0, 1, 1], [], []>} : vector<16x24xf32>, vector<24x32xf32>, vector<16x32xf32> -> vector<16x32xf32>
    %c0_36 = arith.constant 0 : index
    %c0_37 = arith.constant 0 : index
    %c0_38 = arith.constant 0 : index
    %37 = vector.load %arg16[%c0_36, %c0_37, %c0_38] : memref<2x32x32xf32, #tpu.memory_space<vmem>>, vector<1x32x32xf32>
    %38 = vector.shape_cast %37 : vector<1x32x32xf32> to vector<32x32xf32>
    %cst_39 = arith.constant dense<0.000000e+00> : vector<16x32xf32>
    %39 = tpu.matmul %5, %38, %cst_39 {dimension_numbers = #tpu.dot_dimension_numbers<[1], [0], [0], [1], [0, 0, 1, 1], [], []>} : vector<16x32xf32>, vector<32x32xf32>, vector<16x32xf32> -> vector<16x32xf32>
    %c0_40 = arith.constant 0 : index
    %c0_41 = arith.constant 0 : index
    %c0_42 = arith.constant 0 : index
    %40 = vector.load %arg17[%c0_40, %c0_41, %c0_42] : memref<2x32x32xf32, #tpu.memory_space<vmem>>, vector<1x32x32xf32>
    %41 = vector.shape_cast %40 : vector<1x32x32xf32> to vector<32x32xf32>
    %cst_43 = arith.constant dense<0.000000e+00> : vector<16x32xf32>
    %42 = tpu.matmul %36, %41, %cst_43 {dimension_numbers = #tpu.dot_dimension_numbers<[1], [0], [0], [1], [0, 0, 1, 1], [], []>} : vector<16x32xf32>, vector<32x32xf32>, vector<16x32xf32> -> vector<16x32xf32>
    %43 = arith.addf %39, %42 : vector<16x32xf32>
    %c0_44 = arith.constant 0 : index
    %c0_45 = arith.constant 0 : index
    %c0_46 = arith.constant 0 : index
    %44 = vector.load %arg18[%c0_44, %c0_45, %c0_46] : memref<2x1x32xf32, #tpu.memory_space<vmem>>, vector<1x1x32xf32>
    %45 = vector.shape_cast %44 : vector<1x1x32xf32> to vector<1x32xf32>
    %46 = vector.broadcast %45 : vector<1x32xf32> to vector<16x32xf32>
    %47 = arith.addf %43, %46 : vector<16x32xf32>
    %cst_47 = arith.constant 0.000000e+00 : f32
    %48 = vector.broadcast %cst_47 : f32 to vector<16x32xf32>
    %49 = arith.maximumf %47, %48 : vector<16x32xf32>
    %50 = arith.addf %49, %5 : vector<16x32xf32>
    %cst_48 = arith.constant dense<0.000000e+00> : vector<24x32xf32>
    %51 = tpu.matmul %14, %50, %cst_48 {dimension_numbers = #tpu.dot_dimension_numbers<[1], [0], [0], [1], [0, 0, 1, 1], [], []>} : vector<24x16xf32>, vector<16x32xf32>, vector<24x32xf32> -> vector<24x32xf32>
    %cst_49 = arith.constant dense<0.000000e+00> : vector<24x32xf32>
    %52 = tpu.matmul %15, %50, %cst_49 {dimension_numbers = #tpu.dot_dimension_numbers<[1], [0], [0], [1], [0, 0, 1, 1], [], []>} : vector<24x16xf32>, vector<16x32xf32>, vector<24x32xf32> -> vector<24x32xf32>
    %c1 = arith.constant 1 : index
    %c0_50 = arith.constant 0 : index
    %c0_51 = arith.constant 0 : index
    %53 = vector.load %arg12[%c1, %c0_50, %c0_51] : memref<2x32x32xf32, #tpu.memory_space<vmem>>, vector<1x32x32xf32>
    %54 = vector.shape_cast %53 : vector<1x32x32xf32> to vector<32x32xf32>
    %cst_52 = arith.constant dense<0.000000e+00> : vector<24x32xf32>
    %55 = tpu.matmul %52, %54, %cst_52 {dimension_numbers = #tpu.dot_dimension_numbers<[1], [0], [0], [1], [0, 0, 1, 1], [], []>} : vector<24x32xf32>, vector<32x32xf32>, vector<24x32xf32> -> vector<24x32xf32>
    %c1_53 = arith.constant 1 : index
    %c0_54 = arith.constant 0 : index
    %c0_55 = arith.constant 0 : index
    %56 = vector.load %arg13[%c1_53, %c0_54, %c0_55] : memref<2x32x32xf32, #tpu.memory_space<vmem>>, vector<1x32x32xf32>
    %57 = vector.shape_cast %56 : vector<1x32x32xf32> to vector<32x32xf32>
    %cst_56 = arith.constant dense<0.000000e+00> : vector<24x32xf32>
    %58 = tpu.matmul %51, %57, %cst_56 {dimension_numbers = #tpu.dot_dimension_numbers<[1], [0], [0], [1], [0, 0, 1, 1], [], []>} : vector<24x32xf32>, vector<32x32xf32>, vector<24x32xf32> -> vector<24x32xf32>
    %59 = arith.addf %55, %58 : vector<24x32xf32>
    %c1_57 = arith.constant 1 : index
    %c0_58 = arith.constant 0 : index
    %c0_59 = arith.constant 0 : index
    %60 = vector.load %arg14[%c1_57, %c0_58, %c0_59] : memref<2x32x32xf32, #tpu.memory_space<vmem>>, vector<1x32x32xf32>
    %61 = vector.shape_cast %60 : vector<1x32x32xf32> to vector<32x32xf32>
    %cst_60 = arith.constant dense<0.000000e+00> : vector<24x32xf32>
    %62 = tpu.matmul %13, %61, %cst_60 {dimension_numbers = #tpu.dot_dimension_numbers<[1], [0], [0], [1], [0, 0, 1, 1], [], []>} : vector<24x32xf32>, vector<32x32xf32>, vector<24x32xf32> -> vector<24x32xf32>
    %63 = arith.addf %59, %62 : vector<24x32xf32>
    %c1_61 = arith.constant 1 : index
    %c0_62 = arith.constant 0 : index
    %c0_63 = arith.constant 0 : index
    %64 = vector.load %arg15[%c1_61, %c0_62, %c0_63] : memref<2x1x32xf32, #tpu.memory_space<vmem>>, vector<1x1x32xf32>
    %65 = vector.shape_cast %64 : vector<1x1x32xf32> to vector<1x32xf32>
    %66 = vector.broadcast %65 : vector<1x32xf32> to vector<24x32xf32>
    %67 = arith.addf %63, %66 : vector<24x32xf32>
    %cst_64 = arith.constant 0.000000e+00 : f32
    %68 = vector.broadcast %cst_64 : f32 to vector<24x32xf32>
    %69 = arith.maximumf %67, %68 : vector<24x32xf32>
    %cst_65 = arith.constant dense<0.000000e+00> : vector<16x32xf32>
    %70 = tpu.matmul %16, %69, %cst_65 {dimension_numbers = #tpu.dot_dimension_numbers<[1], [0], [0], [1], [0, 0, 1, 1], [], []>} : vector<16x24xf32>, vector<24x32xf32>, vector<16x32xf32> -> vector<16x32xf32>
    %c1_66 = arith.constant 1 : index
    %c0_67 = arith.constant 0 : index
    %c0_68 = arith.constant 0 : index
    %71 = vector.load %arg16[%c1_66, %c0_67, %c0_68] : memref<2x32x32xf32, #tpu.memory_space<vmem>>, vector<1x32x32xf32>
    %72 = vector.shape_cast %71 : vector<1x32x32xf32> to vector<32x32xf32>
    %cst_69 = arith.constant dense<0.000000e+00> : vector<16x32xf32>
    %73 = tpu.matmul %50, %72, %cst_69 {dimension_numbers = #tpu.dot_dimension_numbers<[1], [0], [0], [1], [0, 0, 1, 1], [], []>} : vector<16x32xf32>, vector<32x32xf32>, vector<16x32xf32> -> vector<16x32xf32>
    %c1_70 = arith.constant 1 : index
    %c0_71 = arith.constant 0 : index
    %c0_72 = arith.constant 0 : index
    %74 = vector.load %arg17[%c1_70, %c0_71, %c0_72] : memref<2x32x32xf32, #tpu.memory_space<vmem>>, vector<1x32x32xf32>
    %75 = vector.shape_cast %74 : vector<1x32x32xf32> to vector<32x32xf32>
    %cst_73 = arith.constant dense<0.000000e+00> : vector<16x32xf32>
    %76 = tpu.matmul %70, %75, %cst_73 {dimension_numbers = #tpu.dot_dimension_numbers<[1], [0], [0], [1], [0, 0, 1, 1], [], []>} : vector<16x32xf32>, vector<32x32xf32>, vector<16x32xf32> -> vector<16x32xf32>
    %77 = arith.addf %73, %76 : vector<16x32xf32>
    %c1_74 = arith.constant 1 : index
    %c0_75 = arith.constant 0 : index
    %c0_76 = arith.constant 0 : index
    %78 = vector.load %arg18[%c1_74, %c0_75, %c0_76] : memref<2x1x32xf32, #tpu.memory_space<vmem>>, vector<1x1x32xf32>
    %79 = vector.shape_cast %78 : vector<1x1x32xf32> to vector<1x32xf32>
    %80 = vector.broadcast %79 : vector<1x32xf32> to vector<16x32xf32>
    %81 = arith.addf %77, %80 : vector<16x32xf32>
    %cst_77 = arith.constant 0.000000e+00 : f32
    %82 = vector.broadcast %cst_77 : f32 to vector<16x32xf32>
    %83 = arith.maximumf %81, %82 : vector<16x32xf32>
    %84 = arith.addf %83, %50 : vector<16x32xf32>
    %c0_78 = arith.constant 0 : index
    %c0_79 = arith.constant 0 : index
    %85 = vector.load %arg5[%c0_78, %c0_79] : memref<4x16xf32, #tpu.memory_space<vmem>>, vector<4x16xf32>
    %cst_80 = arith.constant dense<0.000000e+00> : vector<4x32xf32>
    %86 = tpu.matmul %85, %84, %cst_80 {dimension_numbers = #tpu.dot_dimension_numbers<[1], [0], [0], [1], [0, 0, 1, 1], [], []>} : vector<4x16xf32>, vector<16x32xf32>, vector<4x32xf32> -> vector<4x32xf32>
    %c0_81 = arith.constant 0 : index
    %c0_82 = arith.constant 0 : index
    %87 = vector.load %arg6[%c0_81, %c0_82] : memref<4x16xf32, #tpu.memory_space<vmem>>, vector<4x16xf32>
    %cst_83 = arith.constant dense<0.000000e+00> : vector<4x32xf32>
    %88 = tpu.matmul %87, %84, %cst_83 {dimension_numbers = #tpu.dot_dimension_numbers<[1], [0], [0], [1], [0, 0, 1, 1], [], []>} : vector<4x16xf32>, vector<16x32xf32>, vector<4x32xf32> -> vector<4x32xf32>
    %c0_84 = arith.constant 0 : index
    %c0_85 = arith.constant 0 : index
    %89 = vector.load %arg19[%c0_84, %c0_85] : memref<32x32xf32, #tpu.memory_space<vmem>>, vector<32x32xf32>
    %cst_86 = arith.constant dense<0.000000e+00> : vector<4x32xf32>
    %90 = tpu.matmul %86, %89, %cst_86 {dimension_numbers = #tpu.dot_dimension_numbers<[1], [0], [0], [1], [0, 0, 1, 1], [], []>} : vector<4x32xf32>, vector<32x32xf32>, vector<4x32xf32> -> vector<4x32xf32>
    %c0_87 = arith.constant 0 : index
    %c0_88 = arith.constant 0 : index
    %91 = vector.load %arg20[%c0_87, %c0_88] : memref<32x32xf32, #tpu.memory_space<vmem>>, vector<32x32xf32>
    %cst_89 = arith.constant dense<0.000000e+00> : vector<4x32xf32>
    %92 = tpu.matmul %88, %91, %cst_89 {dimension_numbers = #tpu.dot_dimension_numbers<[1], [0], [0], [1], [0, 0, 1, 1], [], []>} : vector<4x32xf32>, vector<32x32xf32>, vector<4x32xf32> -> vector<4x32xf32>
    %93 = arith.addf %90, %92 : vector<4x32xf32>
    %c0_90 = arith.constant 0 : index
    %c0_91 = arith.constant 0 : index
    %94 = vector.load %arg21[%c0_90, %c0_91] : memref<1x32xf32, #tpu.memory_space<vmem>>, vector<1x32xf32>
    %95 = vector.broadcast %94 : vector<1x32xf32> to vector<4x32xf32>
    %96 = arith.addf %93, %95 : vector<4x32xf32>
    %cst_92 = arith.constant 0.000000e+00 : f32
    %97 = vector.broadcast %cst_92 : f32 to vector<4x32xf32>
    %98 = arith.maximumf %96, %97 : vector<4x32xf32>
    %c0_93 = arith.constant 0 : index
    %c0_94 = arith.constant 0 : index
    %99 = vector.load %arg22[%c0_93, %c0_94] : memref<32x16xf32, #tpu.memory_space<vmem>>, vector<32x16xf32>
    %cst_95 = arith.constant dense<0.000000e+00> : vector<4x16xf32>
    %100 = tpu.matmul %98, %99, %cst_95 {dimension_numbers = #tpu.dot_dimension_numbers<[1], [0], [0], [1], [0, 0, 1, 1], [], []>} : vector<4x32xf32>, vector<32x16xf32>, vector<4x16xf32> -> vector<4x16xf32>
    %c0_96 = arith.constant 0 : index
    %c0_97 = arith.constant 0 : index
    %101 = vector.load %arg23[%c0_96, %c0_97] : memref<1x16xf32, #tpu.memory_space<vmem>>, vector<1x16xf32>
    %102 = vector.broadcast %101 : vector<1x16xf32> to vector<4x16xf32>
    %103 = arith.addf %100, %102 : vector<4x16xf32>
    %cst_98 = arith.constant 0.000000e+00 : f32
    %104 = vector.broadcast %cst_98 : f32 to vector<4x16xf32>
    %105 = arith.maximumf %103, %104 : vector<4x16xf32>
    %c0_99 = arith.constant 0 : index
    %c0_100 = arith.constant 0 : index
    %106 = vector.load %arg24[%c0_99, %c0_100] : memref<16x1xf32, #tpu.memory_space<vmem>>, vector<16x1xf32>
    %cst_101 = arith.constant dense<0.000000e+00> : vector<4x1xf32>
    %107 = tpu.matmul %105, %106, %cst_101 {dimension_numbers = #tpu.dot_dimension_numbers<[1], [0], [0], [1], [0, 0, 1, 1], [], []>} : vector<4x16xf32>, vector<16x1xf32>, vector<4x1xf32> -> vector<4x1xf32>
    %c0_102 = arith.constant 0 : index
    %c0_103 = arith.constant 0 : index
    %108 = vector.load %arg25[%c0_102, %c0_103] : memref<1x1xf32, #tpu.memory_space<vmem>>, vector<1x1xf32>
    %109 = vector.broadcast %108 : vector<1x1xf32> to vector<4x1xf32>
    %110 = arith.addf %107, %109 : vector<4x1xf32>
    %c0_104 = arith.constant 0 : index
    %c0_105 = arith.constant 0 : index
    %111 = vector.load %arg7[%c0_104, %c0_105] : memref<4x1xf32, #tpu.memory_space<vmem>>, vector<4x1xf32>
    %112 = arith.subf %110, %111 : vector<4x1xf32>
    %113 = arith.mulf %112, %112 : vector<4x1xf32>
    %114 = vector.shape_cast %113 : vector<4x1xf32> to vector<1x4x1xf32>
    %cst_106 = arith.constant dense<0.000000e+00> : vector<1xf32>
    %115 = vector.multi_reduction <add>, %114, %cst_106 [1, 2] : vector<1x4x1xf32> to vector<1xf32>
    %116 = vector.shape_cast %115 : vector<1xf32> to vector<1x1x1xf32>
    %117 = vector.extract %116[0, 0, 0] : f32 from vector<1x1x1xf32>
    %cst_107 = arith.constant 4.000000e+00 : f32
    %118 = arith.divf %117, %cst_107 : f32
    %119 = vector.broadcast %118 : f32 to vector<1x1xf32>
    %c0_108 = arith.constant 0 : index
    %c0_109 = arith.constant 0 : index
    %120 = vector.load %arg26[%c0_108, %c0_109] : memref<1x1xf32, #tpu.memory_space<vmem>>, vector<1x1xf32>
    tpu.vector_store %arg26[%c0_108, %c0_109], %119 {strides = array<i32>} : memref<1x1xf32, #tpu.memory_space<vmem>>, vector<1x1xf32>,
    return
  }
}

</mosaic_0001>

<bundles_post_ra>
// kernel: tpu_custom_call.1
= control target key start
LH: loop header
LB: loop body
LE: loop exit
PB: predicated region body
PF: predicated region fallthrough
CT: control target
= control target key end

     0   :  { %s3916_s0 = inlined_call_operand.vmem [shape: f32[16,4], index: 0, kind: input, shape index: {}]   ;;  %s3917_s1 = inlined_call_operand.vmem [shape: f32[24,1], index: 1, kind: input, shape index: {}]   ;;  %s3918_s2 = inlined_call_operand.vmem [shape: f32[24,16], index: 2, kind: input, shape index: {}]   ;;  %s3919_s3 = inlined_call_operand.vmem [shape: f32[24,16], index: 3, kind: input, shape index: {}]   ;;  %s3920_s4 = inlined_call_operand.hbm [shape: f32[16,24], index: 4, kind: input, shape index: {}]   ;;  %s3921_s5 = inlined_call_operand.hbm [shape: f32[4,16], index: 5, kind: input, shape index: {}]   ;;  %s3922_s6 = inlined_call_operand.hbm [shape: f32[4,16], index: 6, kind: input, shape index: {}]   ;;  %s3923_s7 = inlined_call_operand.vmem [shape: f32[4,1], index: 7, kind: input, shape index: {}]   ;;  %s3924_s8 = inlined_call_operand.hbm [shape: f32[4,32], index: 8, kind: input, shape index: {}]   ;;  %s3925_s9 = inlined_call_operand.hbm [shape: f32[1,32], index: 9, kind: input, shape index: {}]   ;;  %s3926_s10 = inlined_call_operand.hbm [shape: f32[1,32], index: 10, kind: input, shape index: {}]   ;;  %s3927_s11 = inlined_call_operand.hbm [shape: f32[1,32], index: 11, kind: input, shape index: {}]   ;;  %s3928_s12 = inlined_call_operand.vmem [shape: f32[2,32,32], index: 12, kind: input, shape index: {}]   ;;  %s3929_s13 = inlined_call_operand.vmem [shape: f32[2,32,32], index: 13, kind: input, shape index: {}]   ;;  %s3930_s14 = inlined_call_operand.vmem [shape: f32[2,32,32], index: 14, kind: input, shape index: {}]   ;;  %s3931_s15 = inlined_call_operand.vmem [shape: f32[2,1,32], index: 15, kind: input, shape index: {}]   ;;  %s3932_s16 = inlined_call_operand.vmem [shape: f32[2,32,32], index: 16, kind: input, shape index: {}]   ;;  %s3933_s17 = inlined_call_operand.hbm [shape: f32[2,32,32], index: 17, kind: input, shape index: {}]   ;;  %s3934_s18 = inlined_call_operand.hbm [shape: f32[2,1,32], index: 18, kind: input, shape index: {}]   ;;  %s3935_s19 = inlined_call_operand.hbm [shape: f32[32,32], index: 19, kind: input, shape index: {}]   ;;  %s3936_s20 = inlined_call_operand.hbm [shape: f32[32,32], index: 20, kind: input, shape index: {}]   ;;  %s3937_s21 = inlined_call_operand.vmem [shape: f32[1,32], index: 21, kind: input, shape index: {}]   ;;  %s3938_s22 = inlined_call_operand.vmem [shape: f32[32,16], index: 22, kind: input, shape index: {}]   ;;  %s3939_s23 = inlined_call_operand.vmem [shape: f32[1,16], index: 23, kind: input, shape index: {}]   ;;  %s3940_s24 = inlined_call_operand.vmem [shape: f32[16,1], index: 24, kind: input, shape index: {}]   ;;  %s3941_s25 = inlined_call_operand.<no memory space> [shape: f32[1,1], index: 25, kind: input, shape index: {}]   ;;  %s3942_s26 = inlined_call_operand.hbm [shape: f32[1,1], index: 26, kind: output, shape index: {}]  }
   0x1   :  { %3953 = sst [smem:[#allocation29_spill]] %s3916_s0  ;;  %v31_v0 = vstv %s3941_s25 }
   0x2   :  { %3954 = sst [smem:[#allocation30_spill]] %s3917_s1  ;;  %32 = vst [vmem:[#allocation2] sm:$0x1] %v31_v0 }
   0x3   :  { %3955 = sst [smem:[#allocation31_spill]] %s3918_s2 }
   0x4   :  { %3956 = sst [smem:[#allocation32_spill]] %s3919_s3 }
   0x5   :  { %3957 = sst [smem:[#allocation33_spill]] %s3920_s4 }
   0x6   :  { %3958 = sst [smem:[#allocation34_spill]] %s3921_s5 }
   0x7   :  { %3959 = sst [smem:[#allocation35_spill]] %s3922_s6 }
   0x8   :  { %3960 = sst [smem:[#allocation36_spill]] %s3923_s7 }
   0x9   :  { %3961 = sst [smem:[#allocation37_spill]] %s3924_s8 }
   0xa   :  { %3962 = sst [smem:[#allocation38_spill]] %s3925_s9 }
   0xb   :  { %3963 = sst [smem:[#allocation39_spill]] %s3926_s10 }
   0xc   :  { %33 = vsyncpa [#allocation4], 0 }
   0xd   :  { %34 = vsyncpa [#allocation7], 0 }
   0xe   :  { %35 = vsyncpa [#allocation10], 0 }
   0xf   :  { %36 = vsyncpa [#allocation13], 0 }
  0x10   :  { %37 = vsyncpa [#allocation16], 0 }
  0x11   :  { %38 = vsyncpa [#allocation19], 0 }
  0x12   :  { %39 = vsyncpa [#allocation5], 0  ;;  %s3231_s7 = smov [#allocation6]   ;;  %s3232_s8 = smov [#allocation9]  }
  0x13   :  { %s66_s28 = sshll.u32 %s3231_s7, 4  ;;  %s88_s4 = sshll.u32 %s3232_s8, 4  ;;  %s67_s28 = int_to_ptr.vmem [resolvable:$true] %s66_s28  ;;  %s89_s4 = int_to_ptr.vmem [resolvable:$true] %s88_s4 }
  0x14   :  { %s3964_s9 = sld [smem:[#allocation34_spill]] }
  0x1a   :  { %s2953_s30 = scalar_lea.hbm %s3964_s9, 64 }
  0x1b   :  { %p2954_p0 = scmp.ne.s32.totalorder %s3964_s9, %s2953_s30  ;;  %p2957_p1 = scmp.lt.u32.totalorder %s2953_s30, %s3964_s9 }
  0x1d   :  { %p2959_p2 = pnand %p2957_p1, %p2954_p0 }
  0x1f   :  { %2962 = shalt.err (!%p2959_p2)
}
  0x20   :  { %s2963_s6 = scalar_lea.vmem %s67_s28, 64  ;;  %p2968_p4 = scmp.lt.s32.totalorder %s67_s28, %s67_s28 }
  0x21   :  { %p2964_p3 = scmp.ne.s32.totalorder %s67_s28, %s2963_s6  ;;  %p2969_p5 = scmp.lt.s32.totalorder %s2963_s6, %s2963_s6 }
  0x23   :  { %p2970_p6 = por %p2969_p5, %p2968_p4 }
  0x25   :  { %p2971_p7 = pnand %p2970_p6, %p2964_p3 }
  0x27   :  { %2974 = shalt.err (!%p2971_p7)
}
  0x28   :  { %69 = dma.hbm_to_vmem [thread:$0]  %s3964_s9, 64, %s67_s28, [#allocation7]  }
  0x29   :  { %s3965_s8 = sld [smem:[#allocation37_spill]] }
  0x2f   :  { %s2975_s29 = scalar_lea.hbm %s3965_s8, 64 }
  0x30   :  { %p2976_p8 = scmp.ne.s32.totalorder %s3965_s8, %s2975_s29  ;;  %p2979_p9 = scmp.lt.u32.totalorder %s2975_s29, %s3965_s8 }
  0x32   :  { %p2981_p10 = pnand %p2979_p9, %p2976_p8 }
  0x34   :  { %2984 = shalt.err (!%p2981_p10)
}
  0x35   :  { %s2985_s5 = scalar_lea.vmem %s89_s4, 64  ;;  %p2990_p12 = scmp.lt.s32.totalorder %s89_s4, %s89_s4 }
  0x36   :  { %p2986_p11 = scmp.ne.s32.totalorder %s89_s4, %s2985_s5  ;;  %p2991_p13 = scmp.lt.s32.totalorder %s2985_s5, %s2985_s5 }
  0x38   :  { %p2992_p0 = por %p2991_p13, %p2990_p12 }
  0x3a   :  { %p2993_p1 = pnand %p2992_p0, %p2986_p11 }
  0x3c   :  { %2996 = shalt.err (!%p2993_p1)
}
  0x3d   :  { %91 = dma.hbm_to_vmem [thread:$0]  %s3965_s8, 64, %s89_s4, [#allocation10]  }
  0x3e   :  { %s3233_s10 = smov [#allocation12]   ;;  %s3966_s3 = sld [smem:[#allocation39_spill]] }
  0x3f   :  { %s108_s6 = sshll.u32 %s3233_s10, 4  ;;  %s109_s6 = int_to_ptr.vmem [resolvable:$true] %s108_s6 }
  0x44   :  { %s2997_s7 = scalar_lea.hbm %s3966_s3, 16 }
  0x45   :  { %p2998_p2 = scmp.ne.s32.totalorder %s3966_s3, %s2997_s7  ;;  %p3001_p3 = scmp.lt.u32.totalorder %s2997_s7, %s3966_s3 }
  0x47   :  { %p3003_p4 = pnand %p3001_p3, %p2998_p2 }
  0x49   :  { %3006 = shalt.err (!%p3003_p4)
}
  0x4a   :  { %s3007_s25 = scalar_lea.vmem %s109_s6, 16  ;;  %s3011_s4 = scalar_lea.vmem %s109_s6, 32 }
  0x4b   :  { %p3008_p5 = scmp.ne.s32.totalorder %s109_s6, %s3007_s25  ;;  %p3012_p6 = scmp.lt.s32.totalorder %s109_s6, %s109_s6 }
  0x4c   :  { %p3013_p7 = scmp.lt.s32.totalorder %s3011_s4, %s3007_s25 }
  0x4e   :  { %p3014_p8 = por %p3013_p7, %p3012_p6 }
  0x50   :  { %p3015_p9 = pnand %p3014_p8, %p3008_p5 }
  0x52   :  { %3018 = shalt.err (!%p3015_p9)
}
  0x53   :  { %111 = dma.hbm_to_vmem [thread:$0]  %s3966_s3, 16, %s109_s6, [#allocation13]  }
  0x54   :  { %s3234_s28 = smov [#allocation15]   ;;  %s3235_s10 = smov [#allocation18]  }
  0x55   :  { %s137_s9 = sshll.u32 %s3234_s28, 4  ;;  %s161_s1 = sshll.u32 %s3235_s10, 4  ;;  %s138_s9 = int_to_ptr.vmem [resolvable:$true] %s137_s9  ;;  %s162_s1 = int_to_ptr.vmem [resolvable:$true] %s161_s1 }
  0x56   :  { %s3019_s29 = scalar_lea.hbm %s3933_s17, 1024 }
  0x57   :  { %p3020_p10 = scmp.ne.s32.totalorder %s3933_s17, %s3019_s29  ;;  %p3023_p11 = scmp.lt.u32.totalorder %s3019_s29, %s3933_s17 }
  0x59   :  { %p3025_p12 = pnand %p3023_p11, %p3020_p10 }
  0x5b   :  { %3028 = shalt.err (!%p3025_p12)
}
  0x5c   :  { %s3029_s6 = scalar_lea.vmem %s138_s9, 1024  ;;  %p3034_p0 = scmp.lt.s32.totalorder %s138_s9, %s138_s9 }
  0x5d   :  { %p3030_p13 = scmp.ne.s32.totalorder %s138_s9, %s3029_s6  ;;  %p3035_p1 = scmp.lt.s32.totalorder %s3029_s6, %s3029_s6 }
  0x5f   :  { %p3036_p2 = por %p3035_p1, %p3034_p0 }
  0x61   :  { %p3037_p3 = pnand %p3036_p2, %p3030_p13 }
  0x63   :  { %3040 = shalt.err (!%p3037_p3)
}
  0x64   :  { %s3236_s3 = smov 128   ;;  %s3237_s4 = smov 8  }
  0x65   :  { %143 = dma.hbm_to_vmem [thread:$0]  %s3933_s17, 1024, %s138_s9, [#allocation16], %s3236_s3, %s3236_s3, %s3237_s4  }
  0x66   :  { %s3041_s27 = scalar_lea.hbm %s3935_s19, 512 }
  0x67   :  { %p3042_p4 = scmp.ne.s32.totalorder %s3935_s19, %s3041_s27  ;;  %p3045_p5 = scmp.lt.u32.totalorder %s3041_s27, %s3935_s19 }
  0x69   :  { %p3047_p6 = pnand %p3045_p5, %p3042_p4 }
  0x6b   :  { %3050 = shalt.err (!%p3047_p6)
}
  0x6c   :  { %s3051_s30 = scalar_lea.vmem %s162_s1, 512  ;;  %p3056_p8 = scmp.lt.s32.totalorder %s162_s1, %s162_s1 }
  0x6d   :  { %p3052_p7 = scmp.ne.s32.totalorder %s162_s1, %s3051_s30  ;;  %p3057_p9 = scmp.lt.s32.totalorder %s3051_s30, %s3051_s30 }
  0x6f   :  { %p3058_p10 = por %p3057_p9, %p3056_p8 }
  0x71   :  { %p3059_p11 = pnand %p3058_p10, %p3052_p7 }
  0x73   :  { %3062 = shalt.err (!%p3059_p11)
}
  0x74   :  { %167 = dma.hbm_to_vmem [thread:$0]  %s3935_s19, 512, %s162_s1, [#allocation19], %s3236_s3, %s3236_s3, %s3237_s4  }
  0x75   :  { %s3238_s25 = smov [#allocation3]   ;;  %s3239_s8 = smov [#allocation8]  }
  0x76   :  { %s53_s6 = sshll.u32 %s3238_s25, 4  ;;  %s76_s5 = sshll.u32 %s3239_s8, 4  ;;  %s54_s6 = int_to_ptr.vmem [resolvable:$true] %s53_s6  ;;  %s77_s5 = int_to_ptr.vmem [resolvable:$true] %s76_s5 }
  0x77   :  { %s3967_s27 = sld [smem:[#allocation33_spill]] }
  0x7d   :  { %s3063_s7 = scalar_lea.hbm %s3967_s27, 256 }
  0x7e   :  { %p3064_p12 = scmp.ne.s32.totalorder %s3967_s27, %s3063_s7  ;;  %p3067_p13 = scmp.lt.u32.totalorder %s3063_s7, %s3967_s27 }
  0x80   :  { %p3069_p0 = pnand %p3067_p13, %p3064_p12 }
  0x82   :  { %3072 = shalt.err (!%p3069_p0)
}
  0x83   :  { %s3073_s19 = scalar_lea.vmem %s54_s6, 256  ;;  %p3078_p2 = scmp.lt.s32.totalorder %s54_s6, %s54_s6 }
  0x84   :  { %p3074_p1 = scmp.ne.s32.totalorder %s54_s6, %s3073_s19  ;;  %p3079_p3 = scmp.lt.s32.totalorder %s3073_s19, %s3073_s19 }
  0x86   :  { %p3080_p4 = por %p3079_p3, %p3078_p2 }
  0x88   :  { %p3081_p5 = pnand %p3080_p4, %p3074_p1 }
  0x8a   :  { %3084 = shalt.err (!%p3081_p5)
}
  0x8b   :  { %59 = dma.hbm_to_vmem [thread:$0]  %s3967_s27, 256, %s54_s6, [#allocation4], %s3236_s3, %s3236_s3, %s3237_s4  }
  0x8c   :  { %s3968_s8 = sld [smem:[#allocation35_spill]] }
  0x92   :  { %s3085_s28 = scalar_lea.hbm %s3968_s8, 64 }
  0x93   :  { %p3086_p6 = scmp.ne.s32.totalorder %s3968_s8, %s3085_s28  ;;  %p3089_p7 = scmp.lt.u32.totalorder %s3085_s28, %s3968_s8 }
  0x95   :  { %p3091_p8 = pnand %p3089_p7, %p3086_p6 }
  0x97   :  { %3094 = shalt.err (!%p3091_p8)
}
  0x98   :  { %s3095_s2 = scalar_lea.vmem %s77_s5, 64  ;;  %p3100_p10 = scmp.lt.s32.totalorder %s77_s5, %s77_s5 }
  0x99   :  { %p3096_p9 = scmp.ne.s32.totalorder %s77_s5, %s3095_s2  ;;  %p3101_p11 = scmp.lt.s32.totalorder %s3095_s2, %s3095_s2 }
  0x9b   :  { %p3102_p12 = por %p3101_p11, %p3100_p10 }
  0x9d   :  { %p3103_p13 = pnand %p3102_p12, %p3096_p9 }
  0x9f   :  { %3106 = shalt.err (!%p3103_p13)
}
  0xa0   :  { %79 = dma.hbm_to_vmem [thread:$0]  %s3968_s8, 64, %s77_s5, [#allocation7]  }
  0xa1   :  { %s3240_s30 = smov [#allocation11]   ;;  %s3241_s1 = smov [#allocation14]  }
  0xa2   :  { %s98_s19 = sshll.u32 %s3240_s30, 4  ;;  %s118_s17 = sshll.u32 %s3241_s1, 4  ;;  %s99_s19 = int_to_ptr.vmem [resolvable:$true] %s98_s19  ;;  %s119_s17 = int_to_ptr.vmem [resolvable:$true] %s118_s17 }
  0xa3   :  { %s3969_s28 = sld [smem:[#allocation38_spill]] }
  0xa9   :  { %s3107_s10 = scalar_lea.hbm %s3969_s28, 16 }
  0xaa   :  { %p3108_p0 = scmp.ne.s32.totalorder %s3969_s28, %s3107_s10  ;;  %p3111_p1 = scmp.lt.u32.totalorder %s3107_s10, %s3969_s28 }
  0xac   :  { %p3113_p2 = pnand %p3111_p1, %p3108_p0 }
  0xae   :  { %3116 = shalt.err (!%p3113_p2)
}
  0xaf   :  { %s3117_s5 = scalar_lea.vmem %s99_s19, 16  ;;  %s3121_s8 = scalar_lea.vmem %s99_s19, 32 }
  0xb0   :  { %p3118_p3 = scmp.ne.s32.totalorder %s99_s19, %s3117_s5  ;;  %p3122_p4 = scmp.lt.s32.totalorder %s99_s19, %s99_s19 }
  0xb1   :  { %p3123_p5 = scmp.lt.s32.totalorder %s3121_s8, %s3117_s5 }
  0xb3   :  { %p3124_p6 = por %p3123_p5, %p3122_p4 }
  0xb5   :  { %p3125_p7 = pnand %p3124_p6, %p3118_p3 }
  0xb7   :  { %3128 = shalt.err (!%p3125_p7)
}
  0xb8   :  { %101 = dma.hbm_to_vmem [thread:$0]  %s3969_s28, 16, %s99_s19, [#allocation10]  }
  0xb9   :  { %s3129_s9 = scalar_lea.hbm %s3927_s11, 16 }
  0xba   :  { %p3130_p8 = scmp.ne.s32.totalorder %s3927_s11, %s3129_s9  ;;  %p3133_p9 = scmp.lt.u32.totalorder %s3129_s9, %s3927_s11 }
  0xbc   :  { %p3135_p10 = pnand %p3133_p9, %p3130_p8 }
  0xbe   :  { %3138 = shalt.err (!%p3135_p10)
}
  0xbf   :  { %s3139_s0 = scalar_lea.vmem %s119_s17, 16  ;;  %s3143_s2 = scalar_lea.vmem %s119_s17, 32 }
  0xc0   :  { %p3140_p11 = scmp.ne.s32.totalorder %s119_s17, %s3139_s0  ;;  %p3144_p12 = scmp.lt.s32.totalorder %s119_s17, %s119_s17 }
  0xc1   :  { %p3145_p13 = scmp.lt.s32.totalorder %s3143_s2, %s3139_s0 }
  0xc3   :  { %p3146_p0 = por %p3145_p13, %p3144_p12 }
  0xc5   :  { %p3147_p1 = pnand %p3146_p0, %p3140_p11 }
  0xc7   :  { %3150 = shalt.err (!%p3147_p1)
}
  0xc8   :  { %121 = dma.hbm_to_vmem [thread:$0]  %s3927_s11, 16, %s119_s17, [#allocation13]  }
  0xc9   :  { %s3242_s5 = smov [#allocation17]   ;;  %s3151_s30 = scalar_lea.hbm %s3934_s18, 32 }
  0xca   :  { %s149_s8 = sshll.u32 %s3242_s5, 4  ;;  %p3152_p2 = scmp.ne.s32.totalorder %s3934_s18, %s3151_s30  ;;  %s150_s8 = int_to_ptr.vmem [resolvable:$true] %s149_s8 }
  0xcb   :  { %p3155_p3 = scmp.lt.u32.totalorder %s3151_s30, %s3934_s18 }
  0xcd   :  { %p3157_p4 = pnand %p3155_p3, %p3152_p2 }
  0xcf   :  { %3160 = shalt.err (!%p3157_p4)
}
  0xd0   :  { %s3161_s7 = scalar_lea.vmem %s150_s8, 32  ;;  %p3166_p6 = scmp.lt.s32.totalorder %s150_s8, %s150_s8 }
  0xd1   :  { %p3162_p5 = scmp.ne.s32.totalorder %s150_s8, %s3161_s7  ;;  %p3167_p7 = scmp.lt.s32.totalorder %s3161_s7, %s3161_s7 }
  0xd3   :  { %p3168_p8 = por %p3167_p7, %p3166_p6 }
  0xd5   :  { %p3169_p9 = pnand %p3168_p8, %p3162_p5 }
  0xd7   :  { %3172 = shalt.err (!%p3169_p9)
}
  0xd8   :  { %s3243_s11 = smov 16   ;;  %s3244_s17 = smov 1  }
  0xd9   :  { %155 = dma.hbm_to_vmem [thread:$0]  %s3934_s18, 32, %s150_s8, [#allocation16], %s3243_s11, %s3243_s11, %s3244_s17  }
  0xda   :  { %s3245_s2 = smov [#allocation20]   ;;  %s3173_s6 = scalar_lea.hbm %s3936_s20, 512 }
  0xdb   :  { %s173_s19 = sshll.u32 %s3245_s2, 4  ;;  %p3174_p10 = scmp.ne.s32.totalorder %s3936_s20, %s3173_s6  ;;  %s174_s19 = int_to_ptr.vmem [resolvable:$true] %s173_s19 }
  0xdc   :  { %p3177_p11 = scmp.lt.u32.totalorder %s3173_s6, %s3936_s20 }
  0xde   :  { %p3179_p12 = pnand %p3177_p11, %p3174_p10 }
  0xe0   :  { %3182 = shalt.err (!%p3179_p12)
}
  0xe1   :  { %s3183_s25 = scalar_lea.vmem %s174_s19, 512  ;;  %p3188_p0 = scmp.lt.s32.totalorder %s174_s19, %s174_s19 }
  0xe2   :  { %p3184_p13 = scmp.ne.s32.totalorder %s174_s19, %s3183_s25  ;;  %p3189_p1 = scmp.lt.s32.totalorder %s3183_s25, %s3183_s25 }
  0xe4   :  { %p3190_p2 = por %p3189_p1, %p3188_p0 }
  0xe6   :  { %p3191_p3 = pnand %p3190_p2, %p3184_p13 }
  0xe8   :  { %3194 = shalt.err (!%p3191_p3)
}
  0xe9   :  { %179 = dma.hbm_to_vmem [thread:$0]  %s3936_s20, 512, %s174_s19, [#allocation19], %s3236_s3, %s3236_s3, %s3237_s4  }
  0xea   :  { %3217 = dma.done.wait [#allocation4], 256  }
  0xeb   :  { %3218 = vsyncadd [#allocation4], 4294967040 }
  0xec   :  { %3219 = dma.done.wait [#allocation7], 128  }
  0xed   :  { %3220 = vsyncadd [#allocation7], 4294967168 }
  0xee   :  { %3221 = dma.done.wait [#allocation10], 80  }
  0xef   :  { %3222 = vsyncadd [#allocation10], 4294967216 }
  0xf0   :  { %3223 = dma.done.wait [#allocation13], 32  }
  0xf1   :  { %3224 = vsyncadd [#allocation13], 4294967264 }
  0xf2   :  { %3225 = dma.done.wait [#allocation16], 1056  }
  0xf3   :  { %3226 = vsyncadd [#allocation16], 4294966240 }
  0xf4   :  { %3227 = dma.done.wait [#allocation19], 1024  }
  0xf5   :  { %3228 = vsyncadd [#allocation19], 4294966272  ;;  %vm240_vm0 = vcmask 1043456   ;;  %vm233_vm1 = vcmask 31744   ;;  %v225_v1 = vld [vmem:[#allocation9] sm:$0xf] }
  0xf6   :  { %s3970_s11 = sld [smem:[#allocation29_spill]]  ;;  %2535 = vmatprep.subr.msk.mxu0 %vm240_vm0, %v225_v1  ;;  %v3246_v4 = vmov 0.0|0.0   ;;  %vm3247_vm2 = vmmov 0   ;;  %v3248_v5 = vmov 0.0   ;;  %s3971_s29 = sld [smem:[#allocation30_spill]]  ;;  %v3249_v8 = vmov 0  }
  0xf7   :  { %2536 = vmatpush3.msk.msra.mxu0 %vm240_vm0, %v225_v1  ;;  %2810 = vmatprep.subr.bf16.mxu1 %v3246_v4  ;;  %v2334_v10 = vld [vmem:[#allocation11] ss:$0 sm:$0xff]  ;;  %v548_v15 = vld [vmem:[%s3929_s13] sm:$0xff]  ;;  %v549_v17 = vld [vmem:[%s3929_s13 + $0x8] sm:$0xff]  ;;  %s3972_s7 = sld [smem:[#allocation31_spill]]  ;;  %vm365_vm3 = vcmask 130048  }
  0xf8   :  { %2813 = vmatprep.subr.bf16.mxu0 %v3246_v4  ;;  %2544 = vmatprep.mubr.msk.f32.mxu1 %vm3247_vm2, %v3248_v5  ;;  %v544_v18 = vld [vmem:[%s3928_s12] sm:$0xff]  ;;  %v545_v19 = vld [vmem:[%s3928_s12 + $0x8] sm:$0xff]  ;;  %s3973_s3 = sld [smem:[#allocation32_spill]]  ;;  %v2817_v22 = vpack.c.bf16 %v549_v17, %v548_v15  ;;  %v550_v24 = vld [vmem:[%s3929_s13 + $0x10] sm:$0xff]  ;;  %vm552_vm4 = vcmask 261120   ;;  %vm840_vm5 = vcmask 195584  }
  0xf9   :  { %2951 = vset.pattern.permute.xlu0 %v3249_v8  ;;  %2952 = vset.pattern.permute.xlu1 %v3249_v8  ;;  %v2823_v23 = vpack.c.bf16 %v545_v19, %v544_v18  ;;  %v551_v25 = vld [vmem:[%s3929_s13 + $0x18] sm:$0xff]  ;;  %v546_v26 = vld [vmem:[%s3928_s12 + $0x10] sm:$0xff]  ;;  %v731_v34 = vld [vmem:[%s3930_s14] sm:$0xff]  ;;  %vm2297_vm6 = vcmask 3072   ;;  %vm2312_vm7 = vcmask 0  }
  0xfa   :  { %v547_v27 = vld [vmem:[%s3928_s12 + $0x18] sm:$0xff]  ;;  %v2820_v30 = vpack.c.bf16 %v551_v25, %v550_v24  ;;  %v732_v35 = vld [vmem:[%s3930_s14 + $0x8] sm:$0xff]  ;;  %v733_v40 = vld [vmem:[%s3930_s14 + $0x10] sm:$0xff] }
  0xfb   :  { %v2826_v31 = vpack.c.bf16 %v547_v27, %v546_v26  ;;  %v2829_v37 = vpack.c.bf16 %v732_v35, %v731_v34  ;;  %v734_v41 = vld [vmem:[%s3930_s14 + $0x18] sm:$0xff]  ;;  %v2339_v51 = vld [vmem:[#allocation14] ss:$0 sm:$0xff]  ;;  %v2355_v24 = vld [vmem:[%s3931_s15] ss:$0 sm:$0xff] }
  0xfc   :  { %v223_v2 = vld [vmem:[%s3970_s11] sm:$0xff]  ;;  %v224_v3 = vld [vmem:[%s3970_s11 + $0x8] sm:$0xff]  ;;  %v321_v7 = vld [vmem:[%s3971_s29 + $0x10] sm:$0xff]  ;;  %v2832_v45 = vpack.c.bf16 %v734_v41, %v733_v40 }
  0xfd   :  { %2537 = vmatprep.mubr.msk.f32.mxu0 %vm233_vm1, %v223_v2  ;;  %v319_v6 = vld [vmem:[%s3971_s29] sm:$0xff]  ;;  %335 = vperm.xlu1 %2952, %v321_v7   ;;  %v320_v9 = vld [vmem:[%s3971_s29 + $0x8] sm:$0xff]  ;;  %v3627_v32 = vld [vmem:[%s3972_s7 + $0x10] sm:$0xff] }
  0xfe   :  { %2538 = vmatmul.mubr.msk.f32.vlgmr.msra.gmra.mrb[0].mxu0 %vm233_vm1, %v224_v3  ;;  %325 = vperm.xlu0 %2951, %v319_v6   ;;  %v3575_v20 = vld [vmem:[%s3972_s7] sm:$0xff]  ;;  %v3607_v28 = vld [vmem:[%s3972_s7 + $0x8] sm:$0xff]  ;;  %v3632_v33 = vld [vmem:[%s3973_s3 + $0x10] sm:$0xff] }
  0xff   :  { %2557 = vmatprep.mubr.msk.f32.mxu0 %vm3247_vm2, %v3248_v5  ;;  %v3580_v21 = vld [vmem:[%s3973_s3] sm:$0xff]  ;;  %v3612_v29 = vld [vmem:[%s3973_s3 + $0x8] sm:$0xff]  ;;  %v2338_v44 = vld [vmem:[#allocation12] ss:$0 sm:$0xff] }
 0x100   :  { %v3691_v63 = vld [vmem:[#allocation3] sm:$0xff] }
 0x101   :  { %v926_v41 = vld [vmem:[#allocation15] sm:$0xff] }
 0x102   :  { %330 = vperm.xlu0 %2951, %v320_v9  }
 0x17c   :  { %v336_v58 = vpop.permute.xlu1 %335 }
 0x17d   :  { %v326_v36 = vpop.permute.xlu0 %325  ;;  %v346_v60 = vmul.f32 %v2338_v44, %v336_v58  ;;  %v2362_v58 = vld [vmem:[#allocation17] ss:$0 sm:$0xff] }
 0x17e   :  { %v344_v48 = vmul.f32 %v2338_v44, %v326_v36 }
 0x17f   :  { %v3681_v62 = vadd.f32 %v2339_v51, %v346_v60 }
 0x180   :  { %v3669_v55 = vadd.f32 %v2339_v51, %v344_v48 }
 0x181   :  { %v331_v52 = vpop.permute.xlu0 %330 }
 0x182   :  { %v345_v59 = vmul.f32 %v2338_v44, %v331_v52  ;;  %v928_v44 = vld [vmem:[#allocation15 + $0x10] sm:$0xff] }
 0x183   :  { %v924_v52 = vld [vmem:[%s3932_s16 + $0x10] sm:$0xff] }
 0x184   :  { %v3679_v61 = vadd.f32 %v2339_v51, %v345_v59 }
 0x1d1   :  { %v2539_v11 = vpop.f32.mrb[0].mxu0 }
 0x1d2   :  { %v3554_v12 = vadd.f32 %v2539_v11, %v2334_v10  ;;  %v310_v13 = vpop.f32.mrb[1].mxu0 }
 0x1d3   :  { %v3556_v14 = vadd.f32 %v2334_v10, %v310_v13 }
 0x1d5   :  { %v2811_v16 = vpack.c.bf16 %v3554_v12, %v3556_v14 }
 0x1d7   :  { %2812 = vmatpush3.bf16.msra.mxu1 %v2811_v16  ;;  %2815 = vmatpush3.bf16.msra.mxu0 %v2811_v16 }
 0x1d8   :  { %2816 = vmatprep.subr.bf16.mxu1 %v3246_v4  ;;  %2822 = vmatprep.subr.bf16.mxu0 %v3246_v4 }
 0x1da   :  { %2545 = vmatmul.mubr.msk.f32.vlgmr.msra.gmra.mrb[0].mxu1 %vm365_vm3, %v3575_v20  ;;  %2558 = vmatmul.mubr.msk.f32.vlgmr.msra.gmra.mrb[2].mxu0 %vm365_vm3, %v3580_v21 }
 0x1db   :  { %2547 = vmatprep.mubr.msk.f32.mxu1 %vm3247_vm2, %v3248_v5  ;;  %2560 = vmatprep.mubr.msk.f32.mxu0 %vm3247_vm2, %v3248_v5 }
 0x1dc   :  { %2818 = vmatpush3.bf16.msra.mxu1 %v2817_v22  ;;  %2824 = vmatpush3.bf16.msra.mxu0 %v2823_v23 }
 0x1dd   :  { %2819 = vmatprep.subr.bf16.mxu1 %v3246_v4  ;;  %2825 = vmatprep.subr.bf16.mxu0 %v3246_v4 }
 0x1de   :  { %2548 = vmatmul.mubr.msk.f32.gmra.mrb[2].mxu1 %vm365_vm3, %v3607_v28  ;;  %2561 = vmatmul.mubr.msk.f32.gmra.mrb[4].mxu0 %vm365_vm3, %v3612_v29 }
 0x1df   :  { %2550 = vmatprep.mubr.msk.f32.mxu1 %vm3247_vm2, %v3248_v5  ;;  %2563 = vmatprep.mubr.msk.f32.mxu0 %vm3247_vm2, %v3248_v5 }
 0x1e0   :  { %2821 = vmatpush3.bf16.msra.mxu1 %v2820_v30  ;;  %2827 = vmatpush3.bf16.msra.mxu0 %v2826_v31 }
 0x1e1   :  { %2828 = vmatprep.subr.bf16.mxu1 %v3246_v4 }
 0x1e2   :  { %2551 = vmatmul.mubr.msk.f32.gmra.mrb[4].mxu1 %vm365_vm3, %v3627_v32  ;;  %2564 = vmatmul.mubr.msk.f32.gmra.mrb[6].mxu0 %vm365_vm3, %v3632_v33 }
 0x1e3   :  { %2574 = vmatprep.mubr.msk.f32.mxu1 %vm3247_vm2, %v3248_v5  ;;  %2591 = vmatprep.mubr.msk.f32.mxu0 %vm3247_vm2, %v3248_v5 }
 0x2ad   :  { %v441_v38 = vpop.f32.mrb[0].mxu1  ;;  %v530_v39 = vpop.f32.mrb[2].mxu0 }
 0x2ae   :  { %v2546_v42 = vpop.f32.mrb[1].mxu1  ;;  %2575 = vmatmul.mubr.msk.f32.vlgmr.msra.gmra.mrb[6].mxu1 %vm552_vm4, %v441_v38  ;;  %2592 = vmatmul.mubr.msk.f32.vlgmr.msra.gmra.mrb[8].mxu0 %vm552_vm4, %v530_v39  ;;  %v2559_v43 = vpop.f32.mrb[3].mxu0 }
 0x2af   :  { %2577 = vmatprep.mubr.msk.f32.mxu1 %vm3247_vm2, %v3248_v5  ;;  %2594 = vmatprep.mubr.msk.f32.mxu0 %vm3247_vm2, %v3248_v5  ;;  %v927_v42 = vld [vmem:[#allocation15 + $0x8] sm:$0xff] }
 0x2b0   :  { %2830 = vmatpush3.bf16.msra.mxu1 %v2829_v37 }
 0x2b1   :  { %v446_v46 = vpop.f32.mrb[2].mxu1  ;;  %v535_v47 = vpop.f32.mrb[4].mxu0  ;;  %2831 = vmatprep.subr.bf16.mxu1 %v3246_v4 }
 0x2b2   :  { %v2549_v49 = vpop.f32.mrb[3].mxu1  ;;  %2578 = vmatmul.mubr.msk.f32.gmra.mrb[8].mxu1 %vm552_vm4, %v446_v46  ;;  %2595 = vmatmul.mubr.msk.f32.gmra.mrb[10].mxu0 %vm552_vm4, %v535_v47  ;;  %v2562_v50 = vpop.f32.mrb[5].mxu0  ;;  %v2838_v46 = vpack.c.bf16 %v927_v42, %v926_v41  ;;  %v3698_v47 = vld [vmem:[#allocation3 + $0x8] sm:$0xff]  ;;  %v1638_v41 = vld [vmem:[#allocation15 + $0x30] sm:$0xff] }
 0x2b3   :  { %2580 = vmatprep.mubr.msk.f32.mxu1 %vm3247_vm2, %v3248_v5  ;;  %2597 = vmatprep.mubr.msk.f32.mxu0 %vm3247_vm2, %v3248_v5  ;;  %v922_v49 = vld [vmem:[%s3932_s16] sm:$0xff]  ;;  %v923_v50 = vld [vmem:[%s3932_s16 + $0x8] sm:$0xff] }
 0x2b4   :  { %2833 = vmatpush3.bf16.msra.mxu1 %v2832_v45  ;;  %v929_v45 = vld [vmem:[#allocation15 + $0x18] sm:$0xff]  ;;  %v2846_v51 = vpack.c.bf16 %v923_v50, %v922_v49 }
 0x2b5   :  { %v451_v53 = vpop.f32.mrb[4].mxu1  ;;  %v540_v54 = vpop.f32.mrb[6].mxu0  ;;  %2854 = vmatprep.subr.bf16.mxu1 %v3246_v4  ;;  %v2842_v48 = vpack.c.bf16 %v929_v45, %v928_v44 }
 0x2b6   :  { %v2552_v56 = vpop.f32.mrb[5].mxu1  ;;  %2581 = vmatmul.mubr.msk.f32.gmra.mrb[10].mxu1 %vm552_vm4, %v451_v53  ;;  %2598 = vmatmul.mubr.msk.f32.gmra.mrb[12].mxu0 %vm552_vm4, %v540_v54  ;;  %v2565_v57 = vpop.f32.mrb[7].mxu0  ;;  %v925_v53 = vld [vmem:[%s3932_s16 + $0x18] sm:$0xff] }
 0x2b7   :  { %2608 = vmatprep.mubr.msk.f32.mxu1 %vm3247_vm2, %v3248_v5  ;;  %2623 = vmatprep.mubr.msk.f32.mxu0 %vm840_vm5, %v3691_v63  ;;  %v2850_v57 = vpack.c.bf16 %v925_v53, %v924_v52 }
 0x2ba   :  { %2609 = vmatmul.mubr.msk.f32.vlgmr.msra.gmra.mrb[12].mxu1 %vm552_vm4, %v3669_v55 }
 0x2bb   :  { %2611 = vmatprep.mubr.msk.f32.mxu1 %vm3247_vm2, %v3248_v5 }
 0x2be   :  { %2612 = vmatmul.mubr.msk.f32.gmra.mrb[14].mxu1 %vm552_vm4, %v3679_v61 }
 0x2bf   :  { %2614 = vmatprep.mubr.msk.f32.mxu1 %vm3247_vm2, %v3248_v5 }
 0x2c2   :  { %2615 = vmatmul.mubr.msk.f32.gmra.mrb[16].mxu1 %vm552_vm4, %v3681_v62 }
 0x2c3   :  { %2652 = vmatprep.mubr.msk.f32.mxu1 %vm3247_vm2, %v3248_v5 }
 0x381   :  { %v628_v0 = vpop.f32.mrb[6].mxu1  ;;  %v717_v1 = vpop.f32.mrb[8].mxu0 }
 0x382   :  { %v718_v2 = vadd.f32 %v717_v1, %v628_v0  ;;  %v2576_v3 = vpop.f32.mrb[7].mxu1  ;;  %v2593_v6 = vpop.f32.mrb[9].mxu0 }
 0x385   :  { %v633_v7 = vpop.f32.mrb[8].mxu1  ;;  %v722_v8 = vpop.f32.mrb[10].mxu0 }
 0x386   :  { %v723_v9 = vadd.f32 %v722_v8, %v633_v7  ;;  %v2579_v10 = vpop.f32.mrb[9].mxu1  ;;  %v2596_v11 = vpop.f32.mrb[11].mxu0  ;;  %v2373_v8 = vld [vmem:[%s3929_s13 + $0x20] sm:$0xff] }
 0x387   :  { %v2374_v10 = vld [vmem:[%s3929_s13 + $0x28] sm:$0xff]  ;;  %v2369_v11 = vld [vmem:[%s3928_s12 + $0x20] sm:$0xff] }
 0x389   :  { %v638_v13 = vpop.f32.mrb[10].mxu1  ;;  %v727_v15 = vpop.f32.mrb[12].mxu0 }
 0x38a   :  { %v728_v16 = vadd.f32 %v727_v15, %v638_v13  ;;  %v2582_v17 = vpop.f32.mrb[11].mxu1  ;;  %v2599_v18 = vpop.f32.mrb[13].mxu0  ;;  %v2375_v15 = vld [vmem:[%s3929_s13 + $0x30] sm:$0xff] }
 0x38d   :  { %v810_v19 = vpop.f32.mrb[12].mxu1 }
 0x38e   :  { %v824_v22 = vadd.f32 %v810_v19, %v718_v2  ;;  %v2610_v23 = vpop.f32.mrb[13].mxu1 }
 0x38f   :  { %v2386_v23 = vld [vmem:[%s3930_s14 + $0x38] sm:$0xff] }
 0x390   :  { %v834_v26 = vadd.f32 %v2355_v24, %v824_v22  ;;  %v2385_v22 = vld [vmem:[%s3930_s14 + $0x30] sm:$0xff] }
 0x391   :  { %v815_v25 = vpop.f32.mrb[14].mxu1 }
 0x392   :  { %v825_v27 = vadd.f32 %v815_v25, %v723_v9  ;;  %v2613_v30 = vpop.f32.mrb[15].mxu1  ;;  %v837_v35 = vmax.f32 %v834_v26, 0.0  ;;  %v2876_v26 = vpack.c.bf16 %v2386_v23, %v2385_v22  ;;  %v1965_v22 = vld [vmem:[#allocation18 + $0x8] sm:$0xff] }
 0x394   :  { %v835_v31 = vadd.f32 %v2355_v24, %v825_v27 }
 0x395   :  { %v820_v34 = vpop.f32.mrb[16].mxu1 }
 0x396   :  { %v838_v36 = vmax.f32 %v835_v31, 0.0  ;;  %v826_v37 = vadd.f32 %v820_v34, %v728_v16  ;;  %v2616_v38 = vpop.f32.mrb[17].mxu1  ;;  %v2376_v16 = vld [vmem:[%s3929_s13 + $0x38] sm:$0xff] }
 0x397   :  { %v2864_v17 = vpack.c.bf16 %v2376_v16, %v2375_v15 }
 0x398   :  { %v836_v39 = vadd.f32 %v2355_v24, %v826_v37  ;;  %v2834_v40 = vpack.c.bf16 %v838_v36, %v837_v35 }
 0x39a   :  { %v839_v43 = vmax.f32 %v836_v39, 0.0  ;;  %2835 = vmatprep.subr.bf16.mxu0 %v2834_v40  ;;  %v1636_v39 = vld [vmem:[#allocation15 + $0x20] sm:$0xff] }
 0x39b   :  { %2837 = vmatpush3.bf16.msra.mxu0 %v2834_v40  ;;  %v1637_v40 = vld [vmem:[#allocation15 + $0x28] sm:$0xff] }
 0x39c   :  { %2621 = vmatprep.subr.mxu0 %v839_v43  ;;  %v2882_v42 = vpack.c.bf16 %v1637_v40, %v1636_v39  ;;  %v1968_v39 = vld [vmem:[#allocation20] sm:$0xff]  ;;  %v1969_v40 = vld [vmem:[#allocation20 + $0x8] sm:$0xff] }
 0x39f   :  { %2622 = vmatpush3.msra.mxu0 %v839_v43 }
 0x3a0   :  { %2624 = vmatmul.mubr.msk.f32.vlgmr.msra.gmra.mrb[14].mxu0 %vm840_vm5, %v3698_v47  ;;  %2839 = vmatprep.subr.bf16.mxu0 %v2838_v46 }
 0x3a1   :  { %2841 = vmatpush3.bf16.msra.mxu0 %v2838_v46 }
 0x3a2   :  { %2843 = vmatprep.subr.bf16.mxu0 %v2842_v48 }
 0x3a5   :  { %2845 = vmatpush3.bf16.msra.mxu0 %v2842_v48 }
 0x3a6   :  { %2847 = vmatprep.subr.bf16.mxu0 %v2846_v51 }
 0x473   :  { %v2625_v54 = vpop.f32.mrb[14].mxu0 }
 0x474   :  { %v913_v56 = vpop.f32.mrb[15].mxu0 }
 0x475   :  { %2634 = vmatprep.mubr.msk.f32.mxu0 %vm552_vm4, %v913_v56 }
 0x476   :  { %2635 = vmatmul.mubr.msk.f32.vlgmr.msra.gmra.mrb[16].mxu0 %vm552_vm4, %v2625_v54 }
 0x477   :  { %2849 = vmatpush3.bf16.msra.mxu0 %v2846_v51  ;;  %2645 = vmatprep.mubr.msk.f32.mxu0 %vm552_vm4, %v3556_v14 }
 0x478   :  { %2851 = vmatprep.subr.bf16.mxu0 %v2850_v57 }
 0x47b   :  { %2853 = vmatpush3.bf16.msra.mxu0 %v2850_v57 }
 0x47c   :  { %2857 = vmatprep.subr.bf16.mxu0 %v3246_v4 }
 0x47e   :  { %2646 = vmatmul.mubr.msk.f32.vlgmr.msra.gmra.mrb[16].mxu0 %vm552_vm4, %v3554_v12 }
 0x47f   :  { %2665 = vmatprep.mubr.msk.f32.mxu0 %vm3247_vm2, %v3248_v5 }
 0x551   :  { %v2647_v59 = vpop.f32.mrb[16].mxu0 }
 0x552   :  { %v1100_v60 = vadd.f32 %v2647_v59, %v2362_v58  ;;  %v1083_v0 = vpop.f32.mrb[17].mxu0 }
 0x553   :  { %v1099_v1 = vadd.f32 %v2362_v58, %v1083_v0  ;;  %v2391_v0 = vld [vmem:[%s3931_s15 + $0x1] ss:$0 sm:$0xff] }
 0x554   :  { %v1102_v2 = vmax.f32 %v1100_v60, 0.0 }
 0x555   :  { %v1101_v3 = vmax.f32 %v1099_v1, 0.0 }
 0x556   :  { %v3724_v6 = vadd.f32 %v1102_v2, %v3554_v12  ;;  %v2370_v12 = vld [vmem:[%s3928_s12 + $0x28] sm:$0xff] }
 0x557   :  { %v3727_v7 = vadd.f32 %v1101_v3, %v3556_v14  ;;  %v2861_v14 = vpack.c.bf16 %v2374_v10, %v2373_v8  ;;  %v2867_v13 = vpack.c.bf16 %v2370_v12, %v2369_v11 }
 0x559   :  { %v2855_v9 = vpack.c.bf16 %v3724_v6, %v3727_v7 }
 0x55b   :  { %2856 = vmatpush3.bf16.msra.mxu1 %v2855_v9  ;;  %2859 = vmatpush3.bf16.msra.mxu0 %v2855_v9 }
 0x55c   :  { %2860 = vmatprep.subr.bf16.mxu1 %v3246_v4  ;;  %2866 = vmatprep.subr.bf16.mxu0 %v3246_v4 }
 0x55e   :  { %2653 = vmatmul.mubr.msk.f32.vlgmr.msra.gmra.mrb[18].mxu1 %vm365_vm3, %v3575_v20  ;;  %2666 = vmatmul.mubr.msk.f32.vlgmr.msra.gmra.mrb[18].mxu0 %vm365_vm3, %v3580_v21  ;;  %v2371_v20 = vld [vmem:[%s3928_s12 + $0x30] sm:$0xff]  ;;  %v2372_v21 = vld [vmem:[%s3928_s12 + $0x38] sm:$0xff]  ;;  %s3974_s12 = sld [smem:[#allocation36_spill]] }
 0x55f   :  { %2655 = vmatprep.mubr.msk.f32.mxu1 %vm3247_vm2, %v3248_v5  ;;  %2668 = vmatprep.mubr.msk.f32.mxu0 %vm3247_vm2, %v3248_v5 }
 0x560   :  { %2862 = vmatpush3.bf16.msra.mxu1 %v2861_v14  ;;  %2868 = vmatpush3.bf16.msra.mxu0 %v2867_v13 }
 0x561   :  { %2863 = vmatprep.subr.bf16.mxu1 %v3246_v4  ;;  %2869 = vmatprep.subr.bf16.mxu0 %v3246_v4 }
 0x562   :  { %2656 = vmatmul.mubr.msk.f32.gmra.mrb[20].mxu1 %vm365_vm3, %v3607_v28  ;;  %2669 = vmatmul.mubr.msk.f32.gmra.mrb[20].mxu0 %vm365_vm3, %v3612_v29  ;;  %v2870_v28 = vpack.c.bf16 %v2372_v21, %v2371_v20  ;;  %v2383_v29 = vld [vmem:[%s3930_s14 + $0x20] sm:$0xff]  ;;  %v2395_v21 = vld [vmem:[%s3932_s16 + $0x28] sm:$0xff] }
 0x563   :  { %2658 = vmatprep.mubr.msk.f32.mxu1 %vm3247_vm2, %v3248_v5  ;;  %2671 = vmatprep.mubr.msk.f32.mxu0 %vm3247_vm2, %v3248_v5  ;;  %v2394_v20 = vld [vmem:[%s3932_s16 + $0x20] sm:$0xff] }
 0x564   :  { %2865 = vmatpush3.bf16.msra.mxu1 %v2864_v17  ;;  %2871 = vmatpush3.bf16.msra.mxu0 %v2870_v28  ;;  %v2890_v28 = vpack.c.bf16 %v2395_v21, %v2394_v20 }
 0x565   :  { %2872 = vmatprep.subr.bf16.mxu1 %v3246_v4 }
 0x566   :  { %2659 = vmatmul.mubr.msk.f32.gmra.mrb[22].mxu1 %vm365_vm3, %v3627_v32  ;;  %2672 = vmatmul.mubr.msk.f32.gmra.mrb[22].mxu0 %vm365_vm3, %v3632_v33  ;;  %v2384_v32 = vld [vmem:[%s3930_s14 + $0x28] sm:$0xff] }
 0x567   :  { %2682 = vmatprep.mubr.msk.f32.mxu1 %vm3247_vm2, %v3248_v5  ;;  %2699 = vmatprep.mubr.msk.f32.mxu0 %vm3247_vm2, %v3248_v5  ;;  %v2873_v33 = vpack.c.bf16 %v2384_v32, %v2383_v29  ;;  %v2396_v29 = vld [vmem:[%s3932_s16 + $0x30] sm:$0xff] }
 0x631   :  { %v1171_v18 = vpop.f32.mrb[18].mxu1  ;;  %v1251_v19 = vpop.f32.mrb[18].mxu0 }
 0x632   :  { %2683 = vmatmul.mubr.msk.f32.vlgmr.msra.gmra.mrb[24].mxu1 %vm552_vm4, %v1171_v18  ;;  %v2654_v24 = vpop.f32.mrb[19].mxu1  ;;  %2700 = vmatmul.mubr.msk.f32.vlgmr.msra.gmra.mrb[24].mxu0 %vm552_vm4, %v1251_v19  ;;  %v2667_v25 = vpop.f32.mrb[19].mxu0  ;;  %v1964_v19 = vld [vmem:[#allocation18] sm:$0xff] }
 0x633   :  { %2685 = vmatprep.mubr.msk.f32.mxu1 %vm3247_vm2, %v3248_v5  ;;  %2702 = vmatprep.mubr.msk.f32.mxu0 %vm3247_vm2, %v3248_v5  ;;  %v2911_v23 = vpack.c.bf16 %v1965_v22, %v1964_v19  ;;  %v2402_v24 = vld [vmem:[#allocation17 + $0x1] ss:$0 sm:$0xff] }
 0x634   :  { %2874 = vmatpush3.bf16.msra.mxu1 %v2873_v33 }
 0x635   :  { %v1176_v27 = vpop.f32.mrb[20].mxu1  ;;  %v1256_v30 = vpop.f32.mrb[20].mxu0  ;;  %2875 = vmatprep.subr.bf16.mxu1 %v3246_v4 }
 0x636   :  { %2686 = vmatmul.mubr.msk.f32.gmra.mrb[26].mxu1 %vm552_vm4, %v1176_v27  ;;  %v2657_v31 = vpop.f32.mrb[21].mxu1  ;;  %2703 = vmatmul.mubr.msk.f32.gmra.mrb[26].mxu0 %vm552_vm4, %v1256_v30  ;;  %v2670_v34 = vpop.f32.mrb[21].mxu0 }
 0x637   :  { %2688 = vmatprep.mubr.msk.f32.mxu1 %vm3247_vm2, %v3248_v5  ;;  %2705 = vmatprep.mubr.msk.f32.mxu0 %vm3247_vm2, %v3248_v5 }
 0x638   :  { %2877 = vmatpush3.bf16.msra.mxu1 %v2876_v26 }
 0x639   :  { %v1181_v35 = vpop.f32.mrb[22].mxu1  ;;  %v1261_v36 = vpop.f32.mrb[22].mxu0  ;;  %2883 = vmatprep.subr.bf16.mxu1 %v2882_v42 }
 0x63a   :  { %2689 = vmatmul.mubr.msk.f32.gmra.mrb[28].mxu1 %vm552_vm4, %v1181_v35  ;;  %v2660_v37 = vpop.f32.mrb[23].mxu1  ;;  %2706 = vmatmul.mubr.msk.f32.gmra.mrb[28].mxu0 %vm552_vm4, %v1261_v36  ;;  %v2673_v38 = vpop.f32.mrb[23].mxu0 }
 0x63b   :  { %2716 = vmatprep.mubr.msk.f32.mxu1 %vm3247_vm2, %v3248_v5  ;;  %2731 = vmatprep.mubr.msk.f32.mxu0 %vm840_vm5, %v3691_v63  ;;  %v1639_v63 = vld [vmem:[#allocation15 + $0x38] sm:$0xff]  ;;  %v1816_v38 = vld [vmem:[#allocation6] sm:$0xf] }
 0x63c   :  { %v2886_v43 = vpack.c.bf16 %v1639_v63, %v1638_v41  ;;  %v1890_v41 = vld [vmem:[#allocation8] sm:$0xf] }
 0x63e   :  { %2717 = vmatmul.mubr.msk.f32.vlgmr.msra.gmra.mrb[30].mxu1 %vm552_vm4, %v3669_v55 }
 0x63f   :  { %2719 = vmatprep.mubr.msk.f32.mxu1 %vm3247_vm2, %v3248_v5  ;;  %2885 = vmatpush3.bf16.msra.mxu1 %v2882_v42  ;;  %v2905_v42 = vpack.c.bf16 %v1969_v40, %v1968_v39 }
 0x640   :  { %2887 = vmatprep.subr.bf16.mxu1 %v2886_v43 }
 0x642   :  { %2720 = vmatmul.mubr.msk.f32.gmra.mrb[32].mxu1 %vm552_vm4, %v3679_v61 }
 0x643   :  { %2722 = vmatprep.mubr.msk.f32.mxu1 %vm3247_vm2, %v3248_v5  ;;  %2889 = vmatpush3.bf16.msra.mxu1 %v2886_v43  ;;  %v1970_v43 = vld [vmem:[#allocation20 + $0x10] sm:$0xff] }
 0x644   :  { %2891 = vmatprep.subr.bf16.mxu1 %v2890_v28 }
 0x646   :  { %2723 = vmatmul.mubr.msk.f32.gmra.mrb[34].mxu1 %vm552_vm4, %v3681_v62 }
 0x705   :  { %v1350_v55 = vpop.f32.mrb[24].mxu1  ;;  %v1439_v44 = vpop.f32.mrb[24].mxu0 }
 0x706   :  { %v2684_v45 = vpop.f32.mrb[25].mxu1  ;;  %v1440_v61 = vadd.f32 %v1439_v44, %v1350_v55  ;;  %v2701_v46 = vpop.f32.mrb[25].mxu0  ;;  %v1971_v55 = vld [vmem:[#allocation20 + $0x18] sm:$0xff] }
 0x707   :  { %v2908_v44 = vpack.c.bf16 %v1971_v55, %v1970_v43 }
 0x709   :  { %v1355_v48 = vpop.f32.mrb[26].mxu1  ;;  %v1444_v49 = vpop.f32.mrb[26].mxu0 }
 0x70a   :  { %v2687_v50 = vpop.f32.mrb[27].mxu1  ;;  %v1445_v51 = vadd.f32 %v1444_v49, %v1355_v48  ;;  %v2704_v62 = vpop.f32.mrb[27].mxu0  ;;  %v2127_v49 = vld [vmem:[%s3938_s22] sm:$0xff] }
 0x70b   :  { %v2128_v50 = vld [vmem:[%s3938_s22 + $0x8] sm:$0xff]  ;;  %v2129_v62 = vld [vmem:[%s3938_s22 + $0x10] sm:$0xff] }
 0x70d   :  { %v1360_v52 = vpop.f32.mrb[28].mxu1  ;;  %v1449_v53 = vpop.f32.mrb[28].mxu0 }
 0x70e   :  { %v2690_v54 = vpop.f32.mrb[29].mxu1  ;;  %v1450_v56 = vadd.f32 %v1449_v53, %v1360_v52  ;;  %v2707_v57 = vpop.f32.mrb[29].mxu0 }
 0x70f   :  { %v2407_v57 = vld [vmem:[%s3937_s21] ss:$0 sm:$0xff] }
 0x711   :  { %v1524_v58 = vpop.f32.mrb[30].mxu1 }
 0x712   :  { %v1538_v59 = vadd.f32 %v1524_v58, %v1440_v61  ;;  %v2718_v60 = vpop.f32.mrb[31].mxu1 }
 0x714   :  { %v1549_v2 = vadd.f32 %v2391_v0, %v1538_v59 }
 0x715   :  { %v1529_v1 = vpop.f32.mrb[32].mxu1 }
 0x716   :  { %v1539_v3 = vadd.f32 %v1529_v1, %v1445_v51  ;;  %v2721_v8 = vpop.f32.mrb[33].mxu1  ;;  %v1552_v11 = vmax.f32 %v1549_v2, 0.0  ;;  %v2917_v51 = vpack.c.bf16 %v2128_v50, %v2127_v49  ;;  %v2213_v1 = vld [vmem:[%s3940_s24 + $0x8] sm:$0xff] }
 0x718   :  { %v1550_v9 = vadd.f32 %v2391_v0, %v1539_v3  ;;  %v2408_v3 = vld [vmem:[%s3939_s23] ss:$0 sm:$0xff]  ;;  %s3250_s23 = smov [#allocation21]  }
 0x719   :  { %v1534_v10 = vpop.f32.mrb[34].mxu1 }
 0x71a   :  { %v1553_v12 = vmax.f32 %v1550_v9, 0.0  ;;  %v1540_v14 = vadd.f32 %v1534_v10, %v1450_v56  ;;  %v2724_v13 = vpop.f32.mrb[35].mxu1 }
 0x71b   :  { %v2294_v13 = vld [vmem:[%s3974_s12] sm:$0xf] }
 0x71c   :  { %v1551_v15 = vadd.f32 %v2391_v0, %v1540_v14  ;;  %v2878_v16 = vpack.c.bf16 %v1553_v12, %v1552_v11  ;;  %v2212_v0 = vld [vmem:[%s3940_s24] sm:$0xff]  ;;  %s2320_s24 = sshll.u32 %s3250_s23, 4  ;;  %s2321_s24 = int_to_ptr.vmem [resolvable:$true] %s2320_s24 }
 0x71d   :  { %v2923_v2 = vpack.c.bf16 %v2213_v1, %v2212_v0  ;;  %v2410_v12 = vld [vmem:[#allocation2] ss:$0 sm:$0xff]  ;;  %s3195_s8 = scalar_lea.vmem %s2321_s24, 16  ;;  %s3199_s10 = scalar_lea.vmem %s2321_s24, 32 }
 0x71e   :  { %v1554_v17 = vmax.f32 %v1551_v15, 0.0  ;;  %2879 = vmatprep.subr.bf16.mxu0 %v2878_v16  ;;  %p3196_p4 = scmp.ne.s32.totalorder %s2321_s24, %s3195_s8  ;;  %p3200_p5 = scmp.lt.s32.totalorder %s2321_s24, %s2321_s24 }
 0x71f   :  { %2881 = vmatpush3.bf16.msra.mxu0 %v2878_v16  ;;  %p3201_p6 = scmp.lt.s32.totalorder %s3199_s10, %s3195_s8 }
 0x720   :  { %2729 = vmatprep.subr.mxu0 %v1554_v17 }
 0x721   :  { %p3202_p7 = por %p3201_p6, %p3200_p5 }
 0x723   :  { %2730 = vmatpush3.msra.mxu0 %v1554_v17  ;;  %p3203_p8 = pnand %p3202_p7, %p3196_p4 }
 0x724   :  { %2732 = vmatmul.mubr.msk.f32.vlgmr.msra.gmra.mrb[30].mxu0 %vm840_vm5, %v3698_v47  ;;  %2898 = vmatprep.subr.bf16.mxu0 %v3246_v4  ;;  %v2397_v47 = vld [vmem:[%s3932_s16 + $0x38] sm:$0xff] }
 0x725   :  { %2760 = vmatprep.mubr.msk.f32.mxu0 %vm3247_vm2, %v3248_v5  ;;  %v2894_v18 = vpack.c.bf16 %v2397_v47, %v2396_v29 }
 0x7f7   :  { %v2733_v32 = vpop.f32.mrb[30].mxu0 }
 0x7f8   :  { %v1621_v33 = vpop.f32.mrb[31].mxu0 }
 0x7f9   :  { %2742 = vmatprep.mubr.msk.f32.mxu1 %vm552_vm4, %v1621_v33 }
 0x7fa   :  { %2743 = vmatmul.mubr.msk.f32.vlgmr.msra.gmra.mrb[36].mxu1 %vm552_vm4, %v2733_v32 }
 0x7fb   :  { %2893 = vmatpush3.bf16.msra.mxu1 %v2890_v28  ;;  %2753 = vmatprep.mubr.msk.f32.mxu1 %vm552_vm4, %v3727_v7 }
 0x7fc   :  { %2895 = vmatprep.subr.bf16.mxu1 %v2894_v18 }
 0x7ff   :  { %2897 = vmatpush3.bf16.msra.mxu1 %v2894_v18 }
 0x800   :  { %2910 = vmatprep.subr.bf16.mxu1 %v3246_v4 }
 0x802   :  { %2754 = vmatmul.mubr.msk.f32.vlgmr.msra.gmra.mrb[36].mxu1 %vm552_vm4, %v3724_v6 }
 0x803   :  { %2789 = vmatprep.mubr.msk.f32.mxu1 %vm3247_vm2, %v3248_v5  ;;  %2912 = vmatpush3.bf16.msra.mxu1 %v2911_v23 }
 0x804   :  { %2913 = vmatprep.subr.bf16.mxu1 %v3246_v4 }
 0x8d5   :  { %v2755_v25 = vpop.f32.mrb[36].mxu1 }
 0x8d6   :  { %v1811_v26 = vadd.f32 %v2755_v25, %v2402_v24  ;;  %v1793_v27 = vpop.f32.mrb[37].mxu1 }
 0x8d7   :  { %v1810_v30 = vadd.f32 %v2402_v24, %v1793_v27 }
 0x8d8   :  { %v1813_v31 = vmax.f32 %v1811_v26, 0.0 }
 0x8d9   :  { %v1812_v34 = vmax.f32 %v1810_v30, 0.0 }
 0x8da   :  { %v1815_v35 = vadd.f32 %v1813_v31, %v3724_v6  ;;  %v1966_v6 = vld [vmem:[#allocation18 + $0x10] sm:$0xff] }
 0x8db   :  { %v1814_v36 = vadd.f32 %v1812_v34, %v3727_v7  ;;  %v1967_v7 = vld [vmem:[#allocation18 + $0x18] sm:$0xff] }
 0x8dc   :  { %v2914_v63 = vpack.c.bf16 %v1967_v7, %v1966_v6 }
 0x8dd   :  { %v2899_v37 = vpack.c.bf16 %v1815_v35, %v1814_v36 }
 0x8de   :  { %2915 = vmatpush3.bf16.msra.mxu1 %v2914_v63 }
 0x8df   :  { %2900 = vmatpush3.bf16.msra.mxu0 %v2899_v37  ;;  %2922 = vmatprep.subr.bf16.mxu1 %v3246_v4 }
 0x8e0   :  { %2901 = vmatprep.subr.bf16.mxu0 %v3246_v4 }
 0x8e2   :  { %2761 = vmatmul.mubr.msk.f32.vlgmr.msra.gmra.mrb[32].mxu0 %vm365_vm3, %v1816_v38 }
 0x8e3   :  { %2903 = vmatpush3.bf16.msra.mxu0 %v2899_v37  ;;  %2767 = vmatprep.mubr.msk.f32.mxu0 %vm3247_vm2, %v3248_v5 }
 0x8e4   :  { %2904 = vmatprep.subr.bf16.mxu0 %v3246_v4 }
 0x8e6   :  { %2768 = vmatmul.mubr.msk.f32.vlgmr.msra.gmra.mrb[34].mxu0 %vm365_vm3, %v1890_v41 }
 0x8e7   :  { %2906 = vmatpush3.bf16.msra.mxu0 %v2905_v42  ;;  %2778 = vmatprep.mubr.msk.f32.mxu0 %vm3247_vm2, %v3248_v5 }
 0x8e8   :  { %2907 = vmatprep.subr.bf16.mxu0 %v3246_v4 }
 0x8eb   :  { %2909 = vmatpush3.bf16.msra.mxu0 %v2908_v44 }
 0x8ec   :  { %2916 = vmatprep.subr.bf16.mxu0 %v3246_v4 }
 0x9b5   :  { %v1886_v45 = vpop.f32.mrb[32].mxu0 }
 0x9b6   :  { %v2762_v61 = vpop.f32.mrb[33].mxu0  ;;  %2790 = vmatmul.mubr.msk.f32.vlgmr.msra.gmra.mrb[38].mxu1 %vm552_vm4, %v1886_v45 }
 0x9b7   :  { %2807 = vmatprep.mubr.msk.f32.mxu1 %vm3247_vm2, %v3248_v5  ;;  %2924 = vmatpush3.bf16.msra.mxu1 %v2923_v2 }
 0x9b9   :  { %v1960_v46 = vpop.f32.mrb[34].mxu0 }
 0x9ba   :  { %2779 = vmatmul.mubr.msk.f32.vlgmr.msra.gmra.mrb[36].mxu0 %vm552_vm4, %v1960_v46  ;;  %v2769_v48 = vpop.f32.mrb[35].mxu0 }
 0x9bb   :  { %2800 = vmatprep.mubr.msk.f32.mxu0 %vm3247_vm2, %v3248_v5  ;;  %2918 = vmatpush3.bf16.msra.mxu0 %v2917_v51  ;;  %v2130_v5 = vld [vmem:[%s3938_s22 + $0x18] sm:$0xff] }
 0x9bc   :  { %2919 = vmatprep.subr.bf16.mxu0 %v3246_v4  ;;  %v2920_v52 = vpack.c.bf16 %v2130_v5, %v2129_v62 }
 0x9bf   :  { %2921 = vmatpush3.bf16.msra.mxu0 %v2920_v52 }
 0xa89   :  { %v2114_v53 = vpop.f32.mrb[38].mxu1 }
 0xa8a   :  { %v2791_v54 = vpop.f32.mrb[39].mxu1 }
 0xa8d   :  { %v2041_v56 = vpop.f32.mrb[36].mxu0 }
 0xa8e   :  { %v2115_v58 = vadd.f32 %v2114_v53, %v2041_v56  ;;  %v2780_v59 = vpop.f32.mrb[37].mxu0 }
 0xa90   :  { %v2125_v4 = vadd.f32 %v2407_v57, %v2115_v58 }
 0xa92   :  { %v2126_v60 = vmax.f32 %v2125_v4, 0.0 }
 0xa94   :  { %2801 = vmatmul.mubr.msk.f32.vlgmr.msra.gmra.mrb[38].mxu0 %vm552_vm4, %v2126_v60 }
 0xb67   :  { %v2207_v8 = vpop.f32.mrb[38].mxu0 }
 0xb68   :  { %v2208_v9 = vadd.f32 %v2408_v3, %v2207_v8  ;;  %v2802_v10 = vpop.f32.mrb[39].mxu0 }
 0xb6a   :  { %v2211_v11 = vmax.f32 %v2208_v9, 0.0 }
 0xb6c   :  { %2808 = vmatmul.mubr.msk.f32.vlgmr.msra.gmra.mrb[40].mxu1 %vm365_vm3, %v2211_v11 }
 0xc3f   :  { %v2290_v14 = vpop.f32.mrb[40].mxu1 }
 0xc40   :  { %v2291_v15 = vadd.f32 %v2410_v12, %v2290_v14  ;;  %v2809_v16 = vpop.f32.mrb[41].mxu1 }
 0xc42   :  { %v2295_v17 = vsub.f32 %v2291_v15, %v2294_v13 }
 0xc44   :  { %v2296_v20 = vmul.f32 %v2295_v17, %v2295_v17 }
 0xc46   :  { %v2298_v21 = vsel %vm2297_vm6, %v2296_v20, 0.0 }
 0xc47   :  { %2299 = vadd.xlane.f32.xlu1 %v2298_v21 }
 0xcd4   :  { %v2300_v28 = vpop.xlane.xlu1 %2299 }
 0xcd5   :  { %v2301_v29 = vrot.slane %v2300_v28, 4 }
 0xcd7   :  { %v2302_v47 = vadd.f32 %v2301_v29, %v2300_v28 }
 0xcd9   :  { %v2303_v32 = vrot.slane %v2302_v47, 2 }
 0xcdb   :  { %v2304_v33 = vadd.f32 %v2303_v32, %v2302_v47 }
 0xcdd   :  { %v2305_v18 = vrot.slane %v2304_v33, 1 }
 0xcdf   :  { %v2306_v19 = vadd.f32 %v2305_v18, %v2304_v33 }
 0xce1   :  { %2929 = vpush %v2306_v19 }
 0xd12   :  { %s2930_s14 = spop %2929 }
 0xd13   :  { %s2310_s15 = smul.f32 0.25, %s2930_s14 }
 0xd15   :  { %v2311_v22 = vstv %s2310_s15 }
 0xd16   :  { %2313 = vst.msk [vmem:[#allocation21] sm:$0x1] %vm2312_vm7, %v2311_v22 }
 0xd17   :  { %3206 = shalt.err (!%p3203_p8)
}
 0xd18   :  { %s3207_s20 = scalar_lea.hbm %s3942_s26, 16 }
 0xd19   :  { %p3208_p9 = scmp.ne.s32.totalorder %s3942_s26, %s3207_s20  ;;  %p3211_p10 = scmp.lt.u32.totalorder %s3207_s20, %s3942_s26 }
 0xd1b   :  { %p3213_p11 = pnand %p3211_p10, %p3208_p9 }
 0xd1d   :  { %3216 = shalt.err (!%p3213_p11)
}
 0xd1e   :  { %2323 = dma.vmem_to_hbm [thread:$0]  %s2321_s24, 16, %s3942_s26, [#allocation5]  }
 0xd1f   :  { %3229 = dma.done.wait [#allocation5], 16  }
 0xd20   :  { %3230 = vsyncadd [#allocation5], 4294967280 }
 0xd21   :  { %2327 = vsyncpa [#allocation4], 1 }
 0xd22   :  { %2328 = vsyncpa [#allocation7], 1 }
 0xd23   :  { %2329 = vsyncpa [#allocation10], 1 }
 0xd24   :  { %2330 = vsyncpa [#allocation13], 1 }
 0xd25   :  { %2331 = vsyncpa [#allocation16], 1 }
 0xd26   :  { %2332 = vsyncpa [#allocation19], 1 }
 0xd27   :  { %2333 = vsyncpa [#allocation5], 1 }

</bundles_post_ra>
